<compile_context>
chip_gen: v7x
topology: tpu7x:2x2x1
jax: 0.10.0
libtpu: 0.0.40
codegen_flags: <defaults>
</compile_context>

<pallas_src>
import functools

import jax
import jax.numpy as jnp
from jax.experimental import pallas as pl
from jax.experimental.pallas import tpu as pltpu


# ---------------------------------------------------------------------------
# Fused Pallas kernel: one grid step == one full image of one batch element.
# All activations are lane-packed as (rows, W*C): lane index = w*C + c.
# ---------------------------------------------------------------------------

def _fused_inverted_block_kernel(*refs, H, W, hidden, stride, has_expand, use_res):
    it = iter(refs)
    x_ref = next(it)                                      # (1, H, W*Cin) bf16
    if has_expand:
        w_exp_ref, s_exp_ref, b_exp_ref = next(it), next(it), next(it)
    w_dw_ref, s_dw_ref, b_dw_ref = next(it), next(it), next(it)
    w_proj_ref, s_proj_ref, b_proj_ref = next(it), next(it), next(it)
    o_ref = next(it)                                      # (1, H_out, W_out*ch_out)

    L = W * hidden
    H_out = H // stride

    xb = x_ref[0]                                         # (H, W*Cin) bf16

    # ---- expand 1x1 conv (block-diagonal weight, lane-dense) + BN + ReLU6 ----
    if has_expand:
        h = jnp.dot(xb, w_exp_ref[...], preferred_element_type=jnp.float32)
        h = jnp.clip(h * s_exp_ref[...] + b_exp_ref[...], 0.0, 6.0)
    else:
        h = xb.astype(jnp.float32)                        # hidden == Cin

    # ---- depthwise 3x3, lane-packed (row, w*hidden + c) -----------------------
    # Horizontal taps: shift by `hidden` lanes; the zero block inserted at the
    # edge IS the conv zero-padding, so no per-tap masking is needed.
    zc = jnp.zeros((H, hidden), jnp.float32)
    h_m1 = jnp.concatenate([zc, h[:, :L - hidden]], axis=1)   # value at column w-1
    h_p1 = jnp.concatenate([h[:, hidden:], zc], axis=1)       # value at column w+1
    hv = (h_m1, h, h_p1)

    wdw = w_dw_ref[...]                                   # (9, L) f32, row = 3*kh + kw
    rows = []
    for kh in range(3):
        r = hv[0] * wdw[3 * kh + 0:3 * kh + 1, :]
        r = r + hv[1] * wdw[3 * kh + 1:3 * kh + 2, :]
        r = r + hv[2] * wdw[3 * kh + 2:3 * kh + 3, :]
        rows.append(r)                                    # (H, L), one per vertical tap

    # Vertical taps: shift by one row; the zero row is the top/bottom padding.
    zr = jnp.zeros((1, L), jnp.float32)
    acc = rows[1]
    acc = acc + jnp.concatenate([zr, rows[0][:H - 1, :]], axis=0)   # row i-1
    acc = acc + jnp.concatenate([rows[2][1:, :], zr], axis=0)       # row i+1

    # ---- stride-2 row decimation: one small selection matmul ------------------
    if stride == 2:
        oi = jax.lax.broadcasted_iota(jnp.int32, (H_out, H), 0)
        ii = jax.lax.broadcasted_iota(jnp.int32, (H_out, H), 1)
        sel = (ii == 2 * oi).astype(jnp.float32)
        acc = jnp.dot(sel, acc, preferred_element_type=jnp.float32)  # (H_out, L)

    # ---- depthwise BN + ReLU6 -------------------------------------------------
    y = jnp.clip(acc * s_dw_ref[...] + b_dw_ref[...], 0.0, 6.0)

    # ---- project 1x1 conv + BN (+ residual) -----------------------------------
    # w_proj_ref is block-diagonal; for stride==2 it also drops odd columns, so
    # the result is directly the lane-dense (H_out, W_out*ch_out) output slab.
    p = jnp.dot(y.astype(jnp.bfloat16), w_proj_ref[...],
                preferred_element_type=jnp.float32)
    p = p * s_proj_ref[...] + b_proj_ref[...]
    if use_res:
        p = p + xb.astype(jnp.float32)                    # same lane packing as output
    o_ref[0] = p.astype(o_ref.dtype)


# ---------------------------------------------------------------------------
# Wrapper
# ---------------------------------------------------------------------------

def _tile_channels(v, reps):
    """(C,) per-channel vector -> (1, reps*C) lane-packed row (index w*C + c)."""
    v = v.astype(jnp.float32)
    return jnp.tile(v, reps).reshape(1, v.shape[0] * reps)


def inverted_block_forward(x_nchw, params, *, stride, expand_ratio, ch_in, ch_out):
    assert stride in (1, 2)
    N, Cin, H, W = x_nchw.shape
    assert Cin == ch_in
    assert H % stride == 0 and W % stride == 0
    hidden = ch_in * expand_ratio
    has_expand = expand_ratio != 1
    use_res = (stride == 1) and (ch_in == ch_out)
    H_out, W_out = H // stride, W // stride
    L, Lo = W * hidden, W_out * ch_out

    # NCHW -> lane-packed (N, H, W*Cin) bf16.  bf16 halves the HBM read and feeds
    # the bf16 MXU; the residual therefore also uses the bf16-rounded x (mirrored
    # in the reference).
    # TODO(synk): when chaining blocks, keep activations in this packed layout and
    # only convert NCHW <-> packed at network boundaries.
    x_pack = jnp.transpose(x_nchw, (0, 2, 3, 1)).reshape(N, H, W * Cin)
    x_pack = x_pack.astype(jnp.bfloat16)

    inputs = [x_pack]
    in_specs = [pl.BlockSpec((1, H, W * Cin), lambda n: (n, 0, 0))]

    if has_expand:
        # Block-diagonal expand weight: [w*Cin + ci, w*hidden + co] = w_exp[ci, co].
        w_exp_blk = jnp.kron(jnp.eye(W, dtype=jnp.float32),
                             params["w_exp"].astype(jnp.float32)).astype(jnp.bfloat16)
        inputs += [w_exp_blk,
                   _tile_channels(params["s_exp"], W),
                   _tile_channels(params["b_exp"], W)]
        in_specs += [pl.BlockSpec((W * Cin, L), lambda n: (0, 0)),
                     pl.BlockSpec((1, L), lambda n: (0, 0)),
                     pl.BlockSpec((1, L), lambda n: (0, 0))]

    # Depthwise taps in lane-packed layout: (9, W*hidden), row t=3*kh+kw.
    w_dw_packed = jnp.tile(params["w_dw"].reshape(9, hidden).astype(jnp.float32),
                           (1, W))

    # Projection weight: block-diagonal; for stride==2 only even spatial columns
    # contribute, which performs the column decimation inside the matmul.
    if stride == 1:
        colsel = jnp.eye(W, dtype=jnp.float32)                         # (W, W_out)
    else:
        colsel = (jnp.arange(W)[:, None] == 2 * jnp.arange(W_out)[None, :]
                  ).astype(jnp.float32)
    w_proj_blk = jnp.kron(colsel,
                          params["w_proj"].astype(jnp.float32)).astype(jnp.bfloat16)

    inputs += [w_dw_packed,
               _tile_channels(params["s_dw"], W),
               _tile_channels(params["b_dw"], W),
               w_proj_blk,
               _tile_channels(params["s_proj"], W_out),
               _tile_channels(params["b_proj"], W_out)]
    in_specs += [pl.BlockSpec((9, L), lambda n: (0, 0)),
                 pl.BlockSpec((1, L), lambda n: (0, 0)),
                 pl.BlockSpec((1, L), lambda n: (0, 0)),
                 pl.BlockSpec((L, Lo), lambda n: (0, 0)),
                 pl.BlockSpec((1, Lo), lambda n: (0, 0)),
                 pl.BlockSpec((1, Lo), lambda n: (0, 0))]

    kern = functools.partial(
        _fused_inverted_block_kernel,
        H=H, W=W, hidden=hidden, stride=stride,
        has_expand=has_expand, use_res=use_res)

    out = pl.pallas_call(
        kern,
        grid_spec=pltpu.PrefetchScalarGridSpec(
            num_scalar_prefetch=0,
            grid=(N,),
            in_specs=in_specs,
            out_specs=pl.BlockSpec((1, H_out, Lo), lambda n: (n, 0, 0))),
        out_shape=jax.ShapeDtypeStruct((N, H_out, Lo), jnp.float32),
        compiler_params=pltpu.CompilerParams(
            dimension_semantics=("parallel",)),
    )(*inputs)

    out = out.reshape(N, H_out, W_out, ch_out)
    return jnp.transpose(out, (0, 3, 1, 2))                # back to NCHW


# ---------------------------------------------------------------------------
# Pure-JAX reference.  It mirrors the kernel's quantization points (x, w_exp,
# the depthwise output and w_proj are rounded to bf16; the residual uses the
# bf16-rounded x) so the comparison isolates the conv / BN / ReLU6 / stride /
# padding / residual logic of the kernel.
# ---------------------------------------------------------------------------

def reference_forward(x_nchw, params, *, stride, expand_ratio, ch_in, ch_out):
    use_res = (stride == 1) and (ch_in == ch_out)
    prec = jax.lax.Precision.HIGHEST
    x = jnp.transpose(x_nchw, (0, 2, 3, 1)).astype(jnp.float32)       # NHWC
    xq = x.astype(jnp.bfloat16).astype(jnp.float32)
    h = xq
    if expand_ratio != 1:
        we = params["w_exp"].astype(jnp.bfloat16).astype(jnp.float32)
        h = jnp.einsum("nhwc,cd->nhwd", h, we, precision=prec)
        h = jnp.clip(h * params["s_exp"] + params["b_exp"], 0.0, 6.0)
    n, H, W, C = h.shape
    Ho, Wo = H // stride, W // stride
    hp = jnp.pad(h, ((0, 0), (1, 1), (1, 1), (0, 0)))
    acc = jnp.zeros((n, Ho, Wo, C), jnp.float32)
    for kh in range(3):
        for kw in range(3):
            patch = hp[:, kh:kh + (Ho - 1) * stride + 1:stride,
                       kw:kw + (Wo - 1) * stride + 1:stride, :]
            acc = acc + patch * params["w_dw"][kh, kw]
    h = jnp.clip(acc * params["s_dw"] + params["b_dw"], 0.0, 6.0)
    hq = h.astype(jnp.bfloat16).astype(jnp.float32)
    wp = params["w_proj"].astype(jnp.bfloat16).astype(jnp.float32)
    h = jnp.einsum("nhwc,cd->nhwd", hq, wp, precision=prec)
    h = h * params["s_proj"] + params["b_proj"]
    if use_res:
        h = h + xq
    return jnp.transpose(h, (0, 3, 1, 2))


# ---------------------------------------------------------------------------
# Parameter construction (eval-mode BN folded to scale/bias)
# ---------------------------------------------------------------------------

def make_bn(key, c, eps=1e-5):
    k1, k2, k3, k4 = jax.random.split(key, 4)
    gamma = jax.random.uniform(k1, (c,), minval=0.5, maxval=1.5)
    beta = 0.1 * jax.random.normal(k2, (c,))
    mean = 0.1 * jax.random.normal(k3, (c,))
    var = jax.random.uniform(k4, (c,), minval=0.5, maxval=1.5)
    scale = gamma / jnp.sqrt(var + eps)
    bias = beta - mean * scale
    return scale.astype(jnp.float32), bias.astype(jnp.float32)


def make_params(key, ch_in, ch_out, expand_ratio):
    hidden = ch_in * expand_ratio
    ks = jax.random.split(key, 6)
    params = {}
    if expand_ratio != 1:
        params["w_exp"] = (0.1 * jax.random.normal(ks[0], (ch_in, hidden))).astype(jnp.float32)
        params["s_exp"], params["b_exp"] = make_bn(ks[1], hidden)
    params["w_dw"] = (0.1 * jax.random.normal(ks[2], (3, 3, hidden))).astype(jnp.float32)
    params["s_dw"], params["b_dw"] = make_bn(ks[3], hidden)
    params["w_proj"] = (0.1 * jax.random.normal(ks[4], (hidden, ch_out))).astype(jnp.float32)
    params["s_proj"], params["b_proj"] = make_bn(ks[5], ch_out)
    return params


# ---------------------------------------------------------------------------
# Main
# ---------------------------------------------------------------------------

if __name__ == "__main__":
    key = jax.random.PRNGKey(0)
    kx, kp1, kp2, kp3 = jax.random.split(key, 4)

    N, CIN, H, W = 2, 8, 16, 16
    x = jax.random.normal(kx, (N, CIN, H, W), dtype=jnp.float32)

    # Config 1: expand_ratio=4, stride=1, residual (ch_in == ch_out). W_out*ch_out = 128.
    params1 = make_params(kp1, CIN, CIN, 4)
    out1 = jax.block_until_ready(
        inverted_block_forward(x, params1, stride=1, expand_ratio=4,
                               ch_in=CIN, ch_out=CIN))
    ref1 = reference_forward(x, params1, stride=1, expand_ratio=4,
                             ch_in=CIN, ch_out=CIN)
    assert out1.shape == (N, CIN, H, W)
    assert jnp.allclose(out1, ref1, atol=3e-3, rtol=3e-3), \
        float(jnp.max(jnp.abs(out1 - ref1)))

    # Config 2: expand_ratio=4, stride=2, ch_out=16, no residual. W_out*ch_out = 128.
    params2 = make_params(kp2, CIN, 16, 4)
    out2 = jax.block_until_ready(
        inverted_block_forward(x, params2, stride=2, expand_ratio=4,
                               ch_in=CIN, ch_out=16))
    ref2 = reference_forward(x, params2, stride=2, expand_ratio=4,
                             ch_in=CIN, ch_out=16)
    assert out2.shape == (N, 16, H // 2, W // 2)
    assert jnp.allclose(out2, ref2, atol=3e-3, rtol=3e-3), \
        float(jnp.max(jnp.abs(out2 - ref2)))

    # Config 3: expand_ratio=1 (no expansion conv), stride=1, residual. W_out*ch_out = 256.
    CIN3 = 16
    x3 = jax.random.normal(kx, (N, CIN3, H, W), dtype=jnp.float32)
    params3 = make_params(kp3, CIN3, CIN3, 1)
    out3 = jax.block_until_ready(
        inverted_block_forward(x3, params3, stride=1, expand_ratio=1,
                               ch_in=CIN3, ch_out=CIN3))
    ref3 = reference_forward(x3, params3, stride=1, expand_ratio=1,
                             ch_in=CIN3, ch_out=CIN3)
    assert out3.shape == (N, CIN3, H, W)
    assert jnp.allclose(out3, ref3, atol=3e-3, rtol=3e-3), \
        float(jnp.max(jnp.abs(out3 - ref3)))

    print("KERNEL_OK")
</pallas_src>

<mosaic_0001>
module attributes {stable_mosaic.version = 11 : i64} {
  func.func @_fused_inverted_block_kernel(%arg0: i32, %arg1: memref<1x16x128xbf16, #tpu.memory_space<vmem>>, %arg2: memref<128x512xbf16, #tpu.memory_space<vmem>>, %arg3: memref<1x512xf32, #tpu.memory_space<vmem>>, %arg4: memref<1x512xf32, #tpu.memory_space<vmem>>, %arg5: memref<9x512xf32, #tpu.memory_space<vmem>>, %arg6: memref<1x512xf32, #tpu.memory_space<vmem>>, %arg7: memref<1x512xf32, #tpu.memory_space<vmem>>, %arg8: memref<512x128xbf16, #tpu.memory_space<vmem>>, %arg9: memref<1x128xf32, #tpu.memory_space<vmem>>, %arg10: memref<1x128xf32, #tpu.memory_space<vmem>>, %arg11: memref<1x16x128xf32, #tpu.memory_space<vmem>>) attributes {dimension_semantics = [#tpu.dimension_semantics<parallel>], iteration_bounds = array<i64: 2>, scalar_prefetch = 0 : i64, scratch_operands = 0 : i64, tpu.core_type = #tpu.core_type<tc>, window_params = [{transform_indices = @transform_0, window_bounds = array<i64: 1, 16, 128>}, {pipeline_mode = #tpu.pipeline_mode<synchronous>, transform_indices = @transform_1, window_bounds = array<i64: 128, 512>}, {pipeline_mode = #tpu.pipeline_mode<synchronous>, transform_indices = @transform_2, window_bounds = array<i64: 1, 512>}, {pipeline_mode = #tpu.pipeline_mode<synchronous>, transform_indices = @transform_3, window_bounds = array<i64: 1, 512>}, {pipeline_mode = #tpu.pipeline_mode<synchronous>, transform_indices = @transform_4, window_bounds = array<i64: 9, 512>}, {pipeline_mode = #tpu.pipeline_mode<synchronous>, transform_indices = @transform_5, window_bounds = array<i64: 1, 512>}, {pipeline_mode = #tpu.pipeline_mode<synchronous>, transform_indices = @transform_6, window_bounds = array<i64: 1, 512>}, {pipeline_mode = #tpu.pipeline_mode<synchronous>, transform_indices = @transform_7, window_bounds = array<i64: 512, 128>}, {pipeline_mode = #tpu.pipeline_mode<synchronous>, transform_indices = @transform_8, window_bounds = array<i64: 1, 128>}, {pipeline_mode = #tpu.pipeline_mode<synchronous>, transform_indices = @transform_9, window_bounds = array<i64: 1, 128>}, {transform_indices = @transform_10, window_bounds = array<i64: 1, 16, 128>}]} {
    %c0 = arith.constant 0 : index
    %c0_0 = arith.constant 0 : index
    %c0_1 = arith.constant 0 : index
    %0 = vector.load %arg1[%c0, %c0_0, %c0_1] : memref<1x16x128xbf16, #tpu.memory_space<vmem>>, vector<1x16x128xbf16>
    %1 = vector.shape_cast %0 : vector<1x16x128xbf16> to vector<16x128xbf16>
    %c0_2 = arith.constant 0 : index
    %c0_3 = arith.constant 0 : index
    %2 = vector.load %arg2[%c0_2, %c0_3] : memref<128x512xbf16, #tpu.memory_space<vmem>>, vector<128x512xbf16>
    %cst = arith.constant dense<0.000000e+00> : vector<16x512xf32>
    %3 = tpu.matmul %1, %2, %cst {dimension_numbers = #tpu.dot_dimension_numbers<[1], [0], [0], [1], [0, 0, 1, 1], [], []>} : vector<16x128xbf16>, vector<128x512xbf16>, vector<16x512xf32> -> vector<16x512xf32>
    %c0_4 = arith.constant 0 : index
    %c0_5 = arith.constant 0 : index
    %4 = vector.load %arg3[%c0_4, %c0_5] : memref<1x512xf32, #tpu.memory_space<vmem>>, vector<1x512xf32>
    %5 = vector.broadcast %4 : vector<1x512xf32> to vector<16x512xf32>
    %6 = arith.mulf %3, %5 : vector<16x512xf32>
    %c0_6 = arith.constant 0 : index
    %c0_7 = arith.constant 0 : index
    %7 = vector.load %arg4[%c0_6, %c0_7] : memref<1x512xf32, #tpu.memory_space<vmem>>, vector<1x512xf32>
    %8 = vector.broadcast %7 : vector<1x512xf32> to vector<16x512xf32>
    %9 = arith.addf %6, %8 : vector<16x512xf32>
    %cst_8 = arith.constant 0.000000e+00 : f32
    %cst_9 = arith.constant 6.000000e+00 : f32
    %10 = vector.broadcast %cst_8 : f32 to vector<16x512xf32>
    %11 = arith.maximumf %10, %9 : vector<16x512xf32>
    %12 = vector.broadcast %cst_9 : f32 to vector<16x512xf32>
    %13 = arith.minimumf %12, %11 : vector<16x512xf32>
    %cst_10 = arith.constant 0.000000e+00 : f32
    %14 = vector.broadcast %cst_10 : f32 to vector<16x32xf32>
    %15 = vector.extract_strided_slice %13 {offsets = [0, 0], sizes = [16, 480], strides = [1, 1]} : vector<16x512xf32> to vector<16x480xf32>
    %16 = tpu.concatenate %14, %15 in 1 : vector<16x32xf32>, vector<16x480xf32> -> vector<16x512xf32>
    %17 = vector.extract_strided_slice %13 {offsets = [0, 32], sizes = [16, 480], strides = [1, 1]} : vector<16x512xf32> to vector<16x480xf32>
    %18 = tpu.concatenate %17, %14 in 1 : vector<16x480xf32>, vector<16x32xf32> -> vector<16x512xf32>
    %c0_11 = arith.constant 0 : index
    %c0_12 = arith.constant 0 : index
    %19 = vector.load %arg5[%c0_11, %c0_12] : memref<9x512xf32, #tpu.memory_space<vmem>>, vector<9x512xf32>
    %20 = vector.extract_strided_slice %19 {offsets = [0, 0], sizes = [1, 512], strides = [1, 1]} : vector<9x512xf32> to vector<1x512xf32>
    %21 = vector.broadcast %20 : vector<1x512xf32> to vector<16x512xf32>
    %22 = arith.mulf %16, %21 : vector<16x512xf32>
    %23 = vector.extract_strided_slice %19 {offsets = [1, 0], sizes = [1, 512], strides = [1, 1]} : vector<9x512xf32> to vector<1x512xf32>
    %24 = vector.broadcast %23 : vector<1x512xf32> to vector<16x512xf32>
    %25 = arith.mulf %13, %24 : vector<16x512xf32>
    %26 = arith.addf %22, %25 : vector<16x512xf32>
    %27 = vector.extract_strided_slice %19 {offsets = [2, 0], sizes = [1, 512], strides = [1, 1]} : vector<9x512xf32> to vector<1x512xf32>
    %28 = vector.broadcast %27 : vector<1x512xf32> to vector<16x512xf32>
    %29 = arith.mulf %18, %28 : vector<16x512xf32>
    %30 = arith.addf %26, %29 : vector<16x512xf32>
    %31 = vector.extract_strided_slice %19 {offsets = [3, 0], sizes = [1, 512], strides = [1, 1]} : vector<9x512xf32> to vector<1x512xf32>
    %32 = vector.broadcast %31 : vector<1x512xf32> to vector<16x512xf32>
    %33 = arith.mulf %16, %32 : vector<16x512xf32>
    %34 = vector.extract_strided_slice %19 {offsets = [4, 0], sizes = [1, 512], strides = [1, 1]} : vector<9x512xf32> to vector<1x512xf32>
    %35 = vector.broadcast %34 : vector<1x512xf32> to vector<16x512xf32>
    %36 = arith.mulf %13, %35 : vector<16x512xf32>
    %37 = arith.addf %33, %36 : vector<16x512xf32>
    %38 = vector.extract_strided_slice %19 {offsets = [5, 0], sizes = [1, 512], strides = [1, 1]} : vector<9x512xf32> to vector<1x512xf32>
    %39 = vector.broadcast %38 : vector<1x512xf32> to vector<16x512xf32>
    %40 = arith.mulf %18, %39 : vector<16x512xf32>
    %41 = arith.addf %37, %40 : vector<16x512xf32>
    %42 = vector.extract_strided_slice %19 {offsets = [6, 0], sizes = [1, 512], strides = [1, 1]} : vector<9x512xf32> to vector<1x512xf32>
    %43 = vector.broadcast %42 : vector<1x512xf32> to vector<16x512xf32>
    %44 = arith.mulf %16, %43 : vector<16x512xf32>
    %45 = vector.extract_strided_slice %19 {offsets = [7, 0], sizes = [1, 512], strides = [1, 1]} : vector<9x512xf32> to vector<1x512xf32>
    %46 = vector.broadcast %45 : vector<1x512xf32> to vector<16x512xf32>
    %47 = arith.mulf %13, %46 : vector<16x512xf32>
    %48 = arith.addf %44, %47 : vector<16x512xf32>
    %49 = vector.extract_strided_slice %19 {offsets = [8, 0], sizes = [1, 512], strides = [1, 1]} : vector<9x512xf32> to vector<1x512xf32>
    %50 = vector.broadcast %49 : vector<1x512xf32> to vector<16x512xf32>
    %51 = arith.mulf %18, %50 : vector<16x512xf32>
    %52 = arith.addf %48, %51 : vector<16x512xf32>
    %cst_13 = arith.constant 0.000000e+00 : f32
    %53 = vector.broadcast %cst_13 : f32 to vector<1x512xf32>
    %54 = vector.extract_strided_slice %30 {offsets = [0, 0], sizes = [15, 512], strides = [1, 1]} : vector<16x512xf32> to vector<15x512xf32>
    %55 = tpu.concatenate %53, %54 in 0 : vector<1x512xf32>, vector<15x512xf32> -> vector<16x512xf32>
    %56 = arith.addf %41, %55 : vector<16x512xf32>
    %57 = vector.extract_strided_slice %52 {offsets = [1, 0], sizes = [15, 512], strides = [1, 1]} : vector<16x512xf32> to vector<15x512xf32>
    %58 = tpu.concatenate %57, %53 in 0 : vector<15x512xf32>, vector<1x512xf32> -> vector<16x512xf32>
    %59 = arith.addf %56, %58 : vector<16x512xf32>
    %c0_14 = arith.constant 0 : index
    %c0_15 = arith.constant 0 : index
    %60 = vector.load %arg6[%c0_14, %c0_15] : memref<1x512xf32, #tpu.memory_space<vmem>>, vector<1x512xf32>
    %61 = vector.broadcast %60 : vector<1x512xf32> to vector<16x512xf32>
    %62 = arith.mulf %59, %61 : vector<16x512xf32>
    %c0_16 = arith.constant 0 : index
    %c0_17 = arith.constant 0 : index
    %63 = vector.load %arg7[%c0_16, %c0_17] : memref<1x512xf32, #tpu.memory_space<vmem>>, vector<1x512xf32>
    %64 = vector.broadcast %63 : vector<1x512xf32> to vector<16x512xf32>
    %65 = arith.addf %62, %64 : vector<16x512xf32>
    %cst_18 = arith.constant 0.000000e+00 : f32
    %cst_19 = arith.constant 6.000000e+00 : f32
    %66 = vector.broadcast %cst_18 : f32 to vector<16x512xf32>
    %67 = arith.maximumf %66, %65 : vector<16x512xf32>
    %68 = vector.broadcast %cst_19 : f32 to vector<16x512xf32>
    %69 = arith.minimumf %68, %67 : vector<16x512xf32>
    %70 = arith.truncf %69 : vector<16x512xf32> to vector<16x512xbf16>
    %c0_20 = arith.constant 0 : index
    %c0_21 = arith.constant 0 : index
    %71 = vector.load %arg8[%c0_20, %c0_21] : memref<512x128xbf16, #tpu.memory_space<vmem>>, vector<512x128xbf16>
    %cst_22 = arith.constant dense<0.000000e+00> : vector<16x128xf32>
    %72 = tpu.matmul %70, %71, %cst_22 {dimension_numbers = #tpu.dot_dimension_numbers<[1], [0], [0], [1], [0, 0, 1, 1], [], []>} : vector<16x512xbf16>, vector<512x128xbf16>, vector<16x128xf32> -> vector<16x128xf32>
    %c0_23 = arith.constant 0 : index
    %c0_24 = arith.constant 0 : index
    %73 = vector.load %arg9[%c0_23, %c0_24] : memref<1x128xf32, #tpu.memory_space<vmem>>, vector<1x128xf32>
    %74 = vector.broadcast %73 : vector<1x128xf32> to vector<16x128xf32>
    %75 = arith.mulf %72, %74 : vector<16x128xf32>
    %c0_25 = arith.constant 0 : index
    %c0_26 = arith.constant 0 : index
    %76 = vector.load %arg10[%c0_25, %c0_26] : memref<1x128xf32, #tpu.memory_space<vmem>>, vector<1x128xf32>
    %77 = vector.broadcast %76 : vector<1x128xf32> to vector<16x128xf32>
    %78 = arith.addf %75, %77 : vector<16x128xf32>
    %79 = arith.extf %1 : vector<16x128xbf16> to vector<16x128xf32>
    %80 = arith.addf %78, %79 : vector<16x128xf32>
    %c0_27 = arith.constant 0 : index
    %c0_28 = arith.constant 0 : index
    %c0_29 = arith.constant 0 : index
    %81 = vector.load %arg11[%c0_27, %c0_28, %c0_29] : memref<1x16x128xf32, #tpu.memory_space<vmem>>, vector<1x16x128xf32>
    %82 = vector.shape_cast %81 : vector<1x16x128xf32> to vector<16x128xf32>
    %83 = vector.shape_cast %80 : vector<16x128xf32> to vector<1x16x128xf32>
    tpu.vector_store %arg11[%c0_27, %c0_28, %c0_29], %83 {strides = array<i32>} : memref<1x16x128xf32, #tpu.memory_space<vmem>>, vector<1x16x128xf32>,
    return
  }
  func.func @transform_0(%arg0: i32) -> (i32, i32, i32) {
    %c0_i32 = arith.constant 0 : i32
    %c0_i32_0 = arith.constant 0 : i32
    %c0_i32_1 = arith.constant 0 : i32
    return %arg0, %c0_i32, %c0_i32_0 : i32, i32, i32
  }
  func.func @transform_1(%arg0: i32) -> (i32, i32) {
    %c0_i32 = arith.constant 0 : i32
    %c0_i32_0 = arith.constant 0 : i32
    %c0_i32_1 = arith.constant 0 : i32
    return %c0_i32, %c0_i32_0 : i32, i32
  }
  func.func @transform_2(%arg0: i32) -> (i32, i32) {
    %c0_i32 = arith.constant 0 : i32
    %c0_i32_0 = arith.constant 0 : i32
    %c0_i32_1 = arith.constant 0 : i32
    return %c0_i32, %c0_i32_0 : i32, i32
  }
  func.func @transform_3(%arg0: i32) -> (i32, i32) {
    %c0_i32 = arith.constant 0 : i32
    %c0_i32_0 = arith.constant 0 : i32
    %c0_i32_1 = arith.constant 0 : i32
    return %c0_i32, %c0_i32_0 : i32, i32
  }
  func.func @transform_4(%arg0: i32) -> (i32, i32) {
    %c0_i32 = arith.constant 0 : i32
    %c0_i32_0 = arith.constant 0 : i32
    %c0_i32_1 = arith.constant 0 : i32
    return %c0_i32, %c0_i32_0 : i32, i32
  }
  func.func @transform_5(%arg0: i32) -> (i32, i32) {
    %c0_i32 = arith.constant 0 : i32
    %c0_i32_0 = arith.constant 0 : i32
    %c0_i32_1 = arith.constant 0 : i32
    return %c0_i32, %c0_i32_0 : i32, i32
  }
  func.func @transform_6(%arg0: i32) -> (i32, i32) {
    %c0_i32 = arith.constant 0 : i32
    %c0_i32_0 = arith.constant 0 : i32
    %c0_i32_1 = arith.constant 0 : i32
    return %c0_i32, %c0_i32_0 : i32, i32
  }
  func.func @transform_7(%arg0: i32) -> (i32, i32) {
    %c0_i32 = arith.constant 0 : i32
    %c0_i32_0 = arith.constant 0 : i32
    %c0_i32_1 = arith.constant 0 : i32
    return %c0_i32, %c0_i32_0 : i32, i32
  }
  func.func @transform_8(%arg0: i32) -> (i32, i32) {
    %c0_i32 = arith.constant 0 : i32
    %c0_i32_0 = arith.constant 0 : i32
    %c0_i32_1 = arith.constant 0 : i32
    return %c0_i32, %c0_i32_0 : i32, i32
  }
  func.func @transform_9(%arg0: i32) -> (i32, i32) {
    %c0_i32 = arith.constant 0 : i32
    %c0_i32_0 = arith.constant 0 : i32
    %c0_i32_1 = arith.constant 0 : i32
    return %c0_i32, %c0_i32_0 : i32, i32
  }
  func.func @transform_10(%arg0: i32) -> (i32, i32, i32) {
    %c0_i32 = arith.constant 0 : i32
    %c0_i32_0 = arith.constant 0 : i32
    %c0_i32_1 = arith.constant 0 : i32
    return %arg0, %c0_i32, %c0_i32_0 : i32, i32, i32
  }
}

</mosaic_0001>

<bundles_post_ra>
// kernel: tpu_custom_call.1
= control target key start
LH: loop header
LB: loop body
LE: loop exit
PB: predicated region body
PF: predicated region fallthrough
CT: control target
= control target key end

     0   :  { %s3052_s0 = inlined_call_operand.hbm [shape: bf16[2,16,128], index: 0, kind: input, shape index: {}]   ;;  %s3053_s1 = inlined_call_operand.hbm [shape: bf16[128,512], index: 1, kind: input, shape index: {}]   ;;  %s3054_s2 = inlined_call_operand.vmem [shape: f32[1,512], index: 2, kind: input, shape index: {}]   ;;  %s3055_s3 = inlined_call_operand.vmem [shape: f32[1,512], index: 3, kind: input, shape index: {}]   ;;  %s3056_s4 = inlined_call_operand.hbm [shape: f32[9,512], index: 4, kind: input, shape index: {}]   ;;  %s3057_s5 = inlined_call_operand.vmem [shape: f32[1,512], index: 5, kind: input, shape index: {}]   ;;  %s3058_s6 = inlined_call_operand.vmem [shape: f32[1,512], index: 6, kind: input, shape index: {}]   ;;  %s3059_s7 = inlined_call_operand.hbm [shape: bf16[512,128], index: 7, kind: input, shape index: {}]   ;;  %s3060_s8 = inlined_call_operand.vmem [shape: f32[1,128], index: 8, kind: input, shape index: {}]   ;;  %s3061_s9 = inlined_call_operand.vmem [shape: f32[1,128], index: 9, kind: input, shape index: {}]   ;;  %s3062_s10 = inlined_call_operand.hbm [shape: f32[2,16,128], index: 10, kind: output, shape index: {}]  }
   0x1   :  { %3079 = sst [smem:[#allocation30_spill]] %s3053_s1 }
   0x2   :  { %3080 = sst [smem:[#allocation31_spill]] %s3062_s10 }
   0x3   :  { %15 = vsyncpa [#allocation3], 0 }
   0x4   :  { %17 = vsyncpa [#allocation3 + $0x1], 0 }
   0x5   :  { %18 = vsyncpa [#allocation6], 0 }
   0x6   :  { %19 = vsyncpa [#allocation9], 0 }
   0x7   :  { %20 = vsyncpa [#allocation4], 0 }
   0x8   :  { %22 = vsyncpa [#allocation4 + $0x1], 0  ;;  %s2340_s13 = smov 0   ;;  %s2342_s14 = smov 0  }
   0x9   :  { %s2344_s15 = smov 0   ;;  %s2346_s16 = smov 0  }
   0xa LB: > { %3081 = sst [smem:[#allocation15_spill]] %s2255_s13  ;;  %s2361_s17 = sadd.s32 4294967295, %s2267_s16   ;;  %s2267_s16 = sphi %s2346_s16, %s3132_s16   ;;  %s2263_s15 = sphi %s2344_s15, %s3131_s15   ;;  %s2259_s14 = sphi %s2342_s14, %s3130_s14   ;;  %s2255_s13 = sphi %s2340_s13, %s3129_s13  }
   0xb   : > { %s1771_s18 = sadd.s32 4294967294, %s2267_s16   ;;  %p48_p0 = scmp.ne.s32.totalorder %s2259_s14, %s2255_s13 }
   0xc   : > { %p3063_p1 = scmp.eq.s32.totalorder %s2361_s17, 0  ;;  %p267_p3 = scmp.eq.s32.totalorder %s1771_s18, 1 }
   0xd   : > { %p1772_p5 = scmp.ge.s32.totalorder %s2267_s16, 1  ;;  %p274_p7 = scmp.lt.s32.totalorder %s2267_s16, 3 }
   0xe   : > { %p2370_p4 = por %p3063_p1, %p48_p0  ;;  %p2375_p6 = por %p267_p3, %p48_p0 }
   0xf   : > { %p2380_p8 = pnand %p1772_p5, %p274_p7  ;;  %s2269_s22 = smov [#allocation5]  }
  0x10   : > { %s3082_s19 = scalar_select %p2370_p4, 1, 0 }
  0x11   : > { %s3083_s20 = scalar_select %p2375_p6, 1, 0 }
  0x12   : > { %s3085_s21 = scalar_select %p2380_p8, 1, 0 }
  0x13   : > { %3084 = sst [smem:[#allocation16_spill]] %s3083_s20  ;;  %s286_s23 = sshll.u32 %s2269_s22, 4  ;;  %s2384_s23 = int_to_ptr.vmem [resolvable:$true] %s286_s23 }
  0x14   : > { %p1924_p9 = pneg %p2380_p8  ;;  %s2270_s25 = smov [#allocation7]  }
  0x15   : > { %s305_s26 = sshll.u32 %s2270_s25, 4  ;;  %s3087_s1 = sld [smem:[#allocation30_spill]]  ;;  %s2395_s26 = int_to_ptr.vmem [resolvable:$true] %s305_s26 }
  0x16   : > { %p2391_p11 = pnand %p1924_p9, %p3063_p1 }
  0x18   : > { %p2405_p13 = pneg %p2391_p11 }
  0x1b   : > { %s2079_s29 = scalar_lea.hbm %s3087_s1, 4096 }
  0x1c   : > { %p2080_p12 = scmp.ne.s32.totalorder %s3087_s1, %s2079_s29  ;;  %p2086_p5 = scmp.lt.u32.totalorder %s2079_s29, %s3087_s1 }
  0x1e   : > { %p2082_p0 = pnand %p2405_p13, %p2080_p12 }
  0x20   : > { %p2083_p3 = pneg %p2082_p0 }
  0x22   : > { %p2088_p7 = pnand %p2086_p5, %p2083_p3 }
  0x24   : > { %2091 = shalt.err (!%p2088_p7)
}
  0x25   : > { %s2092_s25 = scalar_lea.vmem %s2384_s23, 4096  ;;  %p2100_p2 = scmp.lt.s32.totalorder %s2384_s23, %s2384_s23 }
  0x26   : > { %p2093_p9 = scmp.ne.s32.totalorder %s2384_s23, %s2092_s25  ;;  %p2101_p6 = scmp.lt.s32.totalorder %s2092_s25, %s2092_s25 }
  0x28   : > { %p2095_p10 = pnand %p2093_p9, %p2405_p13  ;;  %p2102_p12 = por %p2101_p6, %p2100_p2 }
  0x2a   : > { %p2096_p1 = pneg %p2095_p10 }
  0x2c   : > { %p2103_p0 = pnand %p2102_p12, %p2096_p1 }
  0x2e   : > { %2106 = shalt.err (!%p2103_p0)
}
  0x2f   : > { %s2271_s27 = smov 256   ;;  %s2272_s28 = smov 16  }
  0x30   : > { %1927 = dma.hbm_to_vmem [thread:$0]  (!%p2391_p11), %s3087_s1, 4096, %s2384_s23, [#allocation6], %s2271_s27, %s2271_s27, %s2272_s28  }
  0x31   : > { %s2107_s22 = scalar_lea.hbm %s3056_s4, 1024 }
  0x32   : > { %p2108_p2 = scmp.ne.s32.totalorder %s3056_s4, %s2107_s22  ;;  %p2114_p10 = scmp.lt.u32.totalorder %s2107_s22, %s3056_s4 }
  0x34   : > { %p2110_p1 = pnand %p2108_p2, %p2405_p13 }
  0x36   : > { %p2111_p6 = pneg %p2110_p1 }
  0x38   : > { %p2116_p3 = pnand %p2114_p10, %p2111_p6 }
  0x3a   : > { %2119 = shalt.err (!%p2116_p3)
}
  0x3b   : > { %s2120_s23 = scalar_lea.vmem %s2395_s26, 1024  ;;  %p2128_p12 = scmp.lt.s32.totalorder %s2395_s26, %s2395_s26 }
  0x3c   : > { %p2121_p5 = scmp.ne.s32.totalorder %s2395_s26, %s2120_s23  ;;  %p2129_p0 = scmp.lt.s32.totalorder %s2120_s23, %s2120_s23 }
  0x3e   : > { %p2123_p7 = pnand %p2121_p5, %p2405_p13  ;;  %p2130_p2 = por %p2129_p0, %p2128_p12 }
  0x40   : > { %p2124_p9 = pneg %p2123_p7 }
  0x42   : > { %p2131_p1 = pnand %p2130_p2, %p2124_p9 }
  0x44   : > { %2134 = shalt.err (!%p2131_p1)
}
  0x45   : > { %s2273_s13 = smov 512   ;;  %s2274_s10 = smov 32  }
  0x46   : > { %1930 = dma.hbm_to_vmem [thread:$0]  (!%p2391_p11), %s3056_s4, 1024, %s2395_s26, [#allocation6], %s2273_s13, %s2273_s13, %s2274_s10  }
  0x47   : > { %s2275_s28 = smov [#allocation8]   ;;  %s2135_s18 = scalar_lea.hbm %s3059_s7, 4096 }
  0x48   : > { %s324_s29 = sshll.u32 %s2275_s28, 4  ;;  %p2136_p6 = scmp.ne.s32.totalorder %s3059_s7, %s2135_s18  ;;  %s325_s29 = int_to_ptr.vmem [resolvable:$true] %s324_s29 }
  0x49   : > { %p2142_p5 = scmp.lt.u32.totalorder %s2135_s18, %s3059_s7 }
  0x4a   : > { %p2138_p10 = pnand %p2136_p6, %p2405_p13 }
  0x4c   : > { %p2139_p3 = pneg %p2138_p10 }
  0x4e   : > { %p2144_p7 = pnand %p2142_p5, %p2139_p3 }
  0x50   : > { %2147 = shalt.err (!%p2144_p7)
}
  0x51   : > { %s2148_s26 = scalar_lea.vmem %s325_s29, 4096  ;;  %p2156_p2 = scmp.lt.s32.totalorder %s325_s29, %s325_s29 }
  0x52   : > { %p2149_p9 = scmp.ne.s32.totalorder %s325_s29, %s2148_s26  ;;  %p2157_p1 = scmp.lt.s32.totalorder %s2148_s26, %s2148_s26 }
  0x54   : > { %p2151_p12 = pnand %p2149_p9, %p2405_p13  ;;  %p2158_p4 = por %p2157_p1, %p2156_p2 }
  0x56   : > { %p2152_p0 = pneg %p2151_p12 }
  0x58   : > { %p2159_p8 = pnand %p2158_p4, %p2152_p0 }
  0x5a   : > { %2162 = shalt.err (!%p2159_p8)
}
  0x5b   : > { %s2276_s13 = smov 64   ;;  %s2277_s1 = smov 4  }
  0x5c   : > { %1933 = dma.hbm_to_vmem [thread:$0]  (!%p2391_p11), %s3059_s7, 4096, %s325_s29, [#allocation9], %s2276_s13, %s2276_s13, %s2277_s1  }
  0x5d   : > { %s2471_s20 = sadd.s32 1, %s2267_s16   ;;  %s35_s28 = sadd.s32 1, %s2263_s15 }
  0x5e   : > { %s32_s27 = ssub.s32 %s2267_s16, %s2471_s20  ;;  %p42_p8 = scmp.ne.s32.totalorder %s2263_s15, %s2259_s14 }
  0x5f   : > { %p33_p4 = scmp.eq.s32.totalorder %s32_s27, 0  ;;  %p43_p13 = scmp.eq.s32.totalorder %s2267_s16, 0 }
  0x60   : > { %p1945_p6 = scmp.lt.s32.totalorder %s2267_s16, 2  ;;  %p3089_p3 = scmp.eq.s32.totalorder %s2361_s17, 1 }
  0x61   : > { %s2481_s30 = scalar_select %p33_p4, %s2263_s15, %s35_s28  }
  0x62   : > { %p44_p10 = por %p43_p13, %p42_p8  ;;  %p2485_p5 = por %p3089_p3, %p42_p8 }
  0x63   : > { %s344_s11 = sand.u32 1, %s2263_s15   ;;  %s1862_s18 = sshll.u32 %s2267_s16, 7 }
  0x64   : > { %s1777_s29 = sshll.u32 %s344_s11, 3  ;;  %s2494_s23 = scalar_lea.hbm %s3052_s0, %s1862_s18 }
  0x65   : > { %s348_s26 = scalar_lea.vmem [#allocation2], %s1777_s29  ;;  %p2496_p11 = pnand %p1945_p6, %p44_p10 }
  0x66   : > { %s355_s12 = sshll.u32 %s348_s26, 4  ;;  %s2502_s27 = scalar_lea.sflag [#allocation3], %s344_s11  ;;  %s2500_s12 = int_to_ptr.vmem [resolvable:$true] %s355_s12 }
  0x67   : > { %s2163_s28 = scalar_lea.hbm %s2494_s23, 128  ;;  %p2165_p9 = pneg %p2496_p11 }
  0x68   : > { %p2164_p7 = scmp.ne.s32.totalorder %s2494_s23, %s2163_s28  ;;  %s2168_s22 = scalar_lea.hbm %s3052_s0, 256 }
  0x69   : > { %p2169_p2 = scmp.lt.u32.totalorder %s2494_s23, %s3052_s0  ;;  %p2170_p1 = scmp.lt.u32.totalorder %s2168_s22, %s2163_s28 }
  0x6a   : > { %p2166_p12 = pnand %p2165_p9, %p2164_p7  ;;  %p2172_p8 = scmp.lt.u32.totalorder %s2163_s28, %s2494_s23 }
  0x6b   : > { %p2171_p4 = por %p2170_p1, %p2169_p2 }
  0x6c   : > { %p2167_p0 = pneg %p2166_p12 }
  0x6d   : > { %p2173_p13 = por %p2172_p8, %p2171_p4 }
  0x6f   : > { %p2174_p6 = pnand %p2173_p13, %p2167_p0 }
  0x71   : > { %2177 = shalt.err (!%p2174_p6)
}
  0x72   : > { %s2178_s11 = scalar_lea.vmem %s2500_s12, 128  ;;  %s2278_s18 = smov [#allocation2]  }
  0x73   : > { %p2179_p10 = scmp.ne.s32.totalorder %s2500_s12, %s2178_s11  ;;  %s2183_s29 = sshll.u32 %s2278_s18, 4  ;;  %s2184_s29 = int_to_ptr.vmem [resolvable:$false] %s2183_s29 }
  0x74   : > { %s2185_s25 = scalar_lea.vmem %s2184_s29, 256  ;;  %p2186_p12 = scmp.lt.s32.totalorder %s2500_s12, %s2184_s29 }
  0x75   : > { %p2181_p3 = pnand %p2179_p10, %p2165_p9  ;;  %p2187_p2 = scmp.lt.s32.totalorder %s2185_s25, %s2178_s11 }
  0x77   : > { %p2182_p7 = pneg %p2181_p3  ;;  %p2188_p1 = por %p2187_p2, %p2186_p12 }
  0x79   : > { %p2189_p4 = pnand %p2188_p1, %p2182_p7 }
  0x7b   : > { %2192 = shalt.err (!%p2189_p4)
}
  0x7c   : > { %1937 = dma.hbm_to_vmem [thread:$0]  (!%p2496_p11), %s2494_s23, 128, %s2500_s12, %s2502_s27, %s2276_s13, %s2276_s13, %s2277_s1  }
  0x7d   : > { %p3092_p9 = scmp.ne.s32.totalorder %s3085_s21, 0 }
  0x7f   : > { %367 = sbr.rel (%p3092_p9) target bundleno = 814 (0x32e), region = 60 }
  0x86   : > { %s2536_s28 = sand.u32 1, %s2259_s14   ;;  %p3093_p0 = scmp.ne.s32.totalorder %s3082_s19, 0 }
  0x87   : > { %s1781_s22 = sshll.u32 %s2536_s28, 3  ;;  %s370_s26 = scalar_lea.sflag [#allocation3], %s2536_s28 }
  0x88   : > { %s2540_s11 = scalar_lea.vmem [#allocation2], %s1781_s22 }
  0x89   : > { %2238 = dma.done.wait (%p3093_p0), %s370_s26, 128  }
  0x8a   : > { %2240 = vsyncadd (%p3093_p0), %s370_s26, 4294967168  ;;  %p3094_p11 = scmp.eq.s32.totalorder %s2361_s17, 0 }
  0x8c   : > { %2242 = dma.done.wait (%p3094_p11), [#allocation6], 5120   ;;  %p3095_p8 = pmov %p3094_p11 }
  0x8e   : > { %2244 = vsyncadd (%p3095_p8), [#allocation6], 4294962176  ;;  %p3096_p13 = pmov %p3095_p8 }
  0x8f   : > { %p3097_p6 = pmov %p3095_p8 }
  0x90   : > { %2246 = dma.done.wait (%p3096_p13), [#allocation9], 4096  }
  0x91   : > { %2248 = vsyncadd (%p3097_p6), [#allocation9], 4294963200  ;;  %v2279_v0 = vmov 0   ;;  %v1996_v1 = vld [vmem:[#allocation5 + $0x4] ss:$16 sps:$4 sm:$0xff]   ;;  %v711_v34 = vlaneseq  ;;  %s2280_s23 = smov 32  }
  0x92   : > { %655 = vmatprep.mubr.bf16.mxu0 %v2279_v0  ;;  %698 = vmatprep.mubr.bf16.mxu1 %v2279_v0  ;;  %v1998_v2 = vld [vmem:[#allocation5 + $0xc] ss:$16 sps:$4 sm:$0xff]   ;;  %v2000_v3 = vld [vmem:[#allocation5] ss:$16 sps:$4 sm:$0xff]   ;;  %v2001_v4 = vld [vmem:[#allocation5 + $0x8] ss:$16 sps:$4 sm:$0xff]  }
  0x93   : > { %623 = vmatprep.subr.bf16.mxu0 %v1996_v1  ;;  %666 = vmatprep.subr.bf16.mxu1 %v1998_v2  ;;  %v2002_v5 = vld [vmem:[#allocation5 + $0x24] ss:$16 sps:$4 sm:$0xff]   ;;  %v2004_v6 = vld [vmem:[#allocation5 + $0x2c] ss:$16 sps:$4 sm:$0xff]   ;;  %v2006_v7 = vld [vmem:[#allocation5 + $0x20] ss:$16 sps:$4 sm:$0xff]  }
  0x94   : > { %624 = vmatpush1.bf16.msra.mxu0 %v2000_v3  ;;  %667 = vmatpush1.bf16.msra.mxu1 %v2001_v4  ;;  %v2007_v8 = vld [vmem:[#allocation5 + $0x28] ss:$16 sps:$4 sm:$0xff]   ;;  %v2008_v9 = vld [vmem:[#allocation5 + $0x44] ss:$16 sps:$4 sm:$0xff]   ;;  %v2010_v10 = vld [vmem:[#allocation5 + $0x4c] ss:$16 sps:$4 sm:$0xff]  }
  0x95   : > { %625 = vmatprep.subr.bf16.mxu0 %v2002_v5  ;;  %668 = vmatprep.subr.bf16.mxu1 %v2004_v6  ;;  %v2012_v11 = vld [vmem:[#allocation5 + $0x40] ss:$16 sps:$4 sm:$0xff]   ;;  %v2013_v12 = vld [vmem:[#allocation5 + $0x48] ss:$16 sps:$4 sm:$0xff]   ;;  %v2014_v13 = vld [vmem:[#allocation5 + $0x64] ss:$16 sps:$4 sm:$0xff]  }
  0x96   : > { %v2016_v14 = vld [vmem:[#allocation5 + $0x6c] ss:$16 sps:$4 sm:$0xff]   ;;  %v2018_v15 = vld [vmem:[#allocation5 + $0x60] ss:$16 sps:$4 sm:$0xff]   ;;  %v2019_v16 = vld [vmem:[#allocation5 + $0x68] ss:$16 sps:$4 sm:$0xff]  }
  0x97   : > { %v2020_v17 = vld [vmem:[#allocation5 + $0x84] ss:$16 sps:$4 sm:$0xff]   ;;  %v2022_v18 = vld [vmem:[#allocation5 + $0x8c] ss:$16 sps:$4 sm:$0xff]   ;;  %v2024_v19 = vld [vmem:[#allocation5 + $0x80] ss:$16 sps:$4 sm:$0xff]  }
  0x98   : > { %626 = vmatpush1.bf16.msra.mxu0 %v2006_v7  ;;  %669 = vmatpush1.bf16.msra.mxu1 %v2007_v8  ;;  %v2025_v20 = vld [vmem:[#allocation5 + $0x88] ss:$16 sps:$4 sm:$0xff]   ;;  %v2026_v21 = vld [vmem:[#allocation5 + $0xa4] ss:$16 sps:$4 sm:$0xff]   ;;  %v2028_v22 = vld [vmem:[#allocation5 + $0xac] ss:$16 sps:$4 sm:$0xff]  }
  0x99   : > { %627 = vmatprep.subr.bf16.mxu0 %v2008_v9  ;;  %670 = vmatprep.subr.bf16.mxu1 %v2010_v10  ;;  %v2030_v23 = vld [vmem:[#allocation5 + $0xa0] ss:$16 sps:$4 sm:$0xff]   ;;  %v2031_v24 = vld [vmem:[#allocation5 + $0xa8] ss:$16 sps:$4 sm:$0xff]   ;;  %v2032_v25 = vld [vmem:[#allocation5 + $0xc4] ss:$16 sps:$4 sm:$0xff]  }
  0x9a   : > { %v2034_v26 = vld [vmem:[#allocation5 + $0xcc] ss:$16 sps:$4 sm:$0xff]   ;;  %v2036_v27 = vld [vmem:[#allocation5 + $0xc0] ss:$16 sps:$4 sm:$0xff]   ;;  %v2037_v28 = vld [vmem:[#allocation5 + $0xc8] ss:$16 sps:$4 sm:$0xff]  }
  0x9b   : > { %v2038_v29 = vld [vmem:[#allocation5 + $0xe4] ss:$16 sps:$4 sm:$0xff]   ;;  %v2040_v30 = vld [vmem:[#allocation5 + $0xec] ss:$16 sps:$4 sm:$0xff]   ;;  %v2042_v31 = vld [vmem:[#allocation5 + $0xe0] ss:$16 sps:$4 sm:$0xff]  }
  0x9c   : > { %628 = vmatpush1.bf16.msra.mxu0 %v2012_v11  ;;  %671 = vmatpush1.bf16.msra.mxu1 %v2013_v12  ;;  %v2043_v32 = vld [vmem:[#allocation5 + $0xe8] ss:$16 sps:$4 sm:$0xff]   ;;  %v2555_v35 = vshrl.u32 %v711_v34, 7  ;;  %v709_v38 = vld [vmem:[%s3054_s2] sm:$0xf]  ;;  %s2281_s12 = smov 96  }
  0x9d   : > { %629 = vmatprep.subr.bf16.mxu0 %v2014_v13  ;;  %672 = vmatprep.subr.bf16.mxu1 %v2016_v14  ;;  %v423_v33 = vld [vmem:[%s2540_s11] sm:$0xff]   ;;  %v2045_v13 = vld [vmem:[#allocation8 + $0xc0] sm:$0xff]   ;;  %vm809_vm0 = vcmask 261120   ;;  %vm842_vm1 = vcmask 785408   ;;  %vm1139_vm2 = vcmask 1040384   ;;  %vm1180_vm3 = vcmask 1046528  }
  0x9e   : > { %v2558_v36 = vsub.s32 0, %v2555_v35  ;;  %v2561_v37 = vsub.s32 2, %v2555_v35  ;;  %v2567_v39 = vsub.s32 1, %v2555_v35  ;;  %v2570_v40 = vsub.s32 3, %v2555_v35  ;;  %v739_v41 = vld [vmem:[%s3055_s3] sm:$0xf] }
  0x9f   : > { %v2054_v34 = vld [vmem:[#allocation8 + $0x90] sm:$0xff]   ;;  %s1785_s25 = sshll.u32 %s2536_s28, 4  ;;  %s1863_s13 = sshll.u32 %s2361_s17, 8 }
  0xa0   : > { %630 = vmatpush1.bf16.msra.mxu0 %v2018_v15  ;;  %673 = vmatpush1.bf16.msra.mxu1 %v2019_v16  ;;  %v714_v42 = vrot.slane %v709_v38, %v2558_v36  ;;  %v722_v43 = vrot.slane %v709_v38, %v2561_v37  ;;  %v718_v44 = vrot.slane %v709_v38, %v2567_v39  ;;  %s421_s1 = scalar_lea.vmem [#allocation10], %s1785_s25  ;;  %s3124_s27 = sld [smem:[#allocation31_spill]] }
  0xa1   : > { %631 = vmatprep.subr.bf16.mxu0 %v2020_v17  ;;  %674 = vmatprep.subr.bf16.mxu1 %v2022_v18  ;;  %v726_v45 = vrot.slane %v709_v38, %v2570_v40  ;;  %v744_v46 = vrot.slane %v739_v41, %v2558_v36  ;;  %v752_v47 = vrot.slane %v739_v41, %v2561_v37  ;;  %s2282_s17 = smov [#allocation10]  }
  0xa2   : > { %v748_v50 = vrot.slane %v739_v41, %v2567_v39  ;;  %v756_v57 = vrot.slane %v739_v41, %v2570_v40  ;;  %v2055_v41 = vld [vmem:[#allocation8 + $0x50] sm:$0xff]   ;;  %s2197_s25 = sshll.u32 %s2282_s17, 4  ;;  %s2198_s25 = int_to_ptr.vmem [resolvable:$false] %s2197_s25 }
  0xa3   : > { %s2199_s22 = scalar_lea.vmem %s2198_s25, 512 }
  0xa4   : > { %632 = vmatpush1.bf16.msra.mxu0 %v2024_v19  ;;  %675 = vmatpush1.bf16.msra.mxu1 %v2025_v20  ;;  %v2046_v19 = vld [vmem:[#allocation8 + $0x80] sm:$0xff]  }
  0xa5   : > { %633 = vmatprep.subr.bf16.mxu0 %v2026_v21  ;;  %676 = vmatprep.subr.bf16.mxu1 %v2028_v22  ;;  %v2047_v20 = vld [vmem:[#allocation8 + $0x40] sm:$0xff]  }
  0xa6   : > { %s3006_s18 = scalar_lea.hbm %s3124_s27, %s1863_s13 }
  0xa8   : > { %634 = vmatpush1.bf16.msra.mxu0 %v2030_v23  ;;  %677 = vmatpush1.bf16.msra.mxu1 %v2031_v24 }
  0xa9   : > { %635 = vmatprep.subr.bf16.mxu0 %v2032_v25  ;;  %678 = vmatprep.subr.bf16.mxu1 %v2034_v26  ;;  %v2048_v25 = vld [vmem:[#allocation8] sm:$0xff]   ;;  %v2049_v26 = vld [vmem:[#allocation8 + $0xc8] sm:$0xff]  }
  0xac   : > { %636 = vmatpush1.bf16.msra.mxu0 %v2036_v27  ;;  %679 = vmatpush1.bf16.msra.mxu1 %v2037_v28  ;;  %v2050_v27 = vld [vmem:[#allocation8 + $0x88] sm:$0xff]  }
  0xad   : > { %637 = vmatprep.subr.bf16.mxu0 %v2038_v29  ;;  %680 = vmatprep.subr.bf16.mxu1 %v2040_v30  ;;  %v2051_v28 = vld [vmem:[#allocation8 + $0x48] sm:$0xff]   ;;  %v2053_v30 = vld [vmem:[#allocation8 + $0xd0] sm:$0xff]  }
  0xae   : > { %v2052_v29 = vld [vmem:[#allocation8 + $0x8] sm:$0xff]  }
  0xb0   : > { %638 = vmatpush1.bf16.msra.mxu0 %v2042_v31  ;;  %681 = vmatpush1.bf16.msra.mxu1 %v2043_v32 }
  0xb1   : > { %1886 = vmatprep.subr.bf16.mxu1 %v2045_v13  ;;  %1864 = vmatprep.subr.bf16.mxu0 %v2047_v20 }
  0xb3   : > { %656 = vmatmul.mubr.bf16.vlgmr.msra.gmra.mrb[0].mxu0 %v423_v33  ;;  %699 = vmatmul.mubr.bf16.vlgmr.msra.gmra.mrb[0].mxu1 %v423_v33 }
  0xb4   : > { %1887 = vmatpush3.bf16.msra.mxu1 %v2046_v19  ;;  %1865 = vmatpush3.bf16.msra.mxu0 %v2048_v25 }
  0xb5   : > { %1888 = vmatprep.subr.bf16.mxu1 %v2049_v26  ;;  %1866 = vmatprep.subr.bf16.mxu0 %v2051_v28 }
  0xb8   : > { %1889 = vmatpush3.bf16.msra.mxu1 %v2050_v27  ;;  %1867 = vmatpush3.bf16.msra.mxu0 %v2052_v29 }
  0xb9   : > { %1890 = vmatprep.subr.bf16.mxu1 %v2053_v30  ;;  %1868 = vmatprep.subr.bf16.mxu0 %v2055_v41 }
  0xbc   : > { %1891 = vmatpush3.bf16.msra.mxu1 %v2054_v34 }
 0x186   : > { %v657_v48 = vpop.f32.mrb[0].mxu0  ;;  %v700_v49 = vpop.f32.mrb[0].mxu1 }
 0x187   : > { %v731_v51 = vmul.f32 %v714_v42, %v657_v48  ;;  %v733_v52 = vmul.f32 %v722_v43, %v700_v49  ;;  %v659_v53 = vpop.f32.mrb[1].mxu0  ;;  %v702_v54 = vpop.f32.mrb[1].mxu1  ;;  %v2062_v48 = vld [vmem:[#allocation8 + $0xa0] sm:$0xff]  }
 0x188   : > { %v732_v55 = vmul.f32 %v718_v44, %v659_v53  ;;  %v734_v56 = vmul.f32 %v726_v45, %v702_v54  ;;  %v661_v58 = vpop.f32.mrb[2].mxu0  ;;  %v704_v59 = vpop.f32.mrb[2].mxu1  ;;  %v2063_v49 = vld [vmem:[#allocation8 + $0x60] sm:$0xff]   ;;  %v2067_v53 = vld [vmem:[#allocation8 + $0x68] sm:$0xff]  }
 0x189   : > { %v761_v60 = vadd.f32 %v744_v46, %v731_v51  ;;  %v763_v61 = vadd.f32 %v752_v47, %v733_v52  ;;  %v663_v62 = vpop.f32.mrb[3].mxu0  ;;  %v706_v63 = vpop.f32.mrb[3].mxu1  ;;  %v735_v8 = vmul.f32 %v714_v42, %v661_v58  ;;  %v737_v14 = vmul.f32 %v722_v43, %v704_v59  ;;  %v2056_v42 = vld [vmem:[#allocation8 + $0x10] sm:$0xff]   ;;  %v2057_v43 = vld [vmem:[#allocation8 + $0xd8] sm:$0xff]   ;;  %v2065_v51 = vld [vmem:[#allocation8 + $0xe8] sm:$0xff]  }
 0x18a   : > { %v762_v0 = vadd.f32 %v748_v50, %v732_v55  ;;  %v764_v3 = vadd.f32 %v756_v57, %v734_v56  ;;  %v736_v7 = vmul.f32 %v718_v44, %v663_v62  ;;  %v738_v12 = vmul.f32 %v726_v45, %v706_v63  ;;  %1892 = vmatprep.subr.bf16.mxu1 %v2057_v43  ;;  %v2058_v44 = vld [vmem:[#allocation8 + $0x98] sm:$0xff]   ;;  %v2066_v52 = vld [vmem:[#allocation8 + $0xa8] sm:$0xff]   ;;  %v2069_v55 = vld [vmem:[#allocation8 + $0xf0] sm:$0xff]  }
 0x18b   : > { %v769_v1 = vmax.f32 %v761_v60, 0.0  ;;  %v771_v2 = vmax.f32 %v763_v61, 0.0  ;;  %v765_v16 = vadd.f32 %v744_v46, %v735_v8  ;;  %v767_v22 = vadd.f32 %v752_v47, %v737_v14  ;;  %1869 = vmatpush3.bf16.msra.mxu0 %v2056_v42  ;;  %1893 = vmatpush3.bf16.msra.mxu1 %v2058_v44  ;;  %v2059_v45 = vld [vmem:[#allocation8 + $0x58] sm:$0xff]   ;;  %v2061_v47 = vld [vmem:[#allocation8 + $0xe0] sm:$0xff]   ;;  %v2068_v54 = vld [vmem:[#allocation8 + $0x28] sm:$0xff]  }
 0x18c   : > { %v770_v6 = vmax.f32 %v762_v0, 0.0  ;;  %v772_v10 = vmax.f32 %v764_v3, 0.0  ;;  %v766_v11 = vadd.f32 %v748_v50, %v736_v7  ;;  %v768_v18 = vadd.f32 %v756_v57, %v738_v12  ;;  %v2060_v46 = vld [vmem:[#allocation8 + $0x18] sm:$0xff]   ;;  %1870 = vmatprep.subr.bf16.mxu0 %v2059_v45  ;;  %1894 = vmatprep.subr.bf16.mxu1 %v2061_v47  ;;  %v2064_v50 = vld [vmem:[#allocation8 + $0x20] sm:$0xff]   ;;  %v2070_v56 = vld [vmem:[#allocation8 + $0xb0] sm:$0xff]  }
 0x18d   : > { %v2583_v4 = vmin.f32 %v769_v1, 6.0  ;;  %v2585_v5 = vmin.f32 %v771_v2, 6.0  ;;  %v773_v21 = vmax.f32 %v765_v16, 0.0  ;;  %v775_v32 = vmax.f32 %v767_v22, 0.0  ;;  %v2071_v57 = vld [vmem:[#allocation8 + $0x70] sm:$0xff]   ;;  %v2073_v59 = vld [vmem:[#allocation8 + $0xf8] sm:$0xff]  }
 0x18e   : > { %v2591_v9 = vmin.f32 %v770_v6, 6.0  ;;  %v2597_v15 = vmin.f32 %v772_v10, 6.0  ;;  %v774_v17 = vmax.f32 %v766_v11, 0.0  ;;  %v776_v24 = vmax.f32 %v768_v18, 0.0  ;;  %v2072_v58 = vld [vmem:[#allocation8 + $0x30] sm:$0xff]   ;;  %v2074_v60 = vld [vmem:[#allocation8 + $0xb8] sm:$0xff]  }
 0x18f   : > { %797 = vrot.lane.b32.xlu1 %v2585_v5, %s2280_s23  ;;  %793 = vrot.lane.b32.xlu0 %v2583_v4, %s2280_s23  ;;  %v2609_v31 = vmin.f32 %v773_v21, 6.0  ;;  %v2617_v38 = vmin.f32 %v775_v32, 6.0  ;;  %v2075_v61 = vld [vmem:[#allocation8 + $0x78] sm:$0xff]   ;;  %v981_v63 = vsub.s32 4, %v2555_v35  ;;  %v2632_v0 = vld [vmem:[#allocation7] sm:$0xff]  ;;  %v1069_v1 = vsub.s32 7, %v2555_v35 }
 0x190   : > { %v2603_v23 = vmin.f32 %v774_v17, 6.0  ;;  %v2611_v33 = vmin.f32 %v776_v24, 6.0  ;;  %1871 = vmatpush3.bf16.msra.mxu0 %v2060_v46  ;;  %1895 = vmatpush3.bf16.msra.mxu1 %v2062_v48  ;;  %v2076_v62 = vld [vmem:[#allocation8 + $0x38] sm:$0xff]   ;;  %v860_v2 = vld [vmem:[#allocation7 + $0x8] sm:$0xff]  ;;  %v861_v3 = vld [vmem:[#allocation7 + $0x10] sm:$0xff]  ;;  %v894_v7 = vrot.slane %v2632_v0, %v2567_v39  ;;  %v1045_v10 = vsub.s32 6, %v2555_v35 }
 0x191   : > { %1872 = vmatprep.subr.bf16.mxu0 %v2063_v49  ;;  %1896 = vmatprep.subr.bf16.mxu1 %v2065_v51  ;;  %v862_v6 = vld [vmem:[#allocation7 + $0x18] sm:$0xff]  ;;  %v982_v8 = vrot.slane %v2632_v0, %v981_v63  ;;  %v1070_v11 = vrot.slane %v2632_v0, %v1069_v1  ;;  %v898_v12 = vrot.slane %v860_v2, %v2567_v39  ;;  %v1013_v47 = vsub.s32 5, %v2555_v35 }
 0x192   : > { %v902_v13 = vrot.slane %v861_v3, %v2567_v39  ;;  %v990_v14 = vrot.slane %v861_v3, %v981_v63  ;;  %v986_v16 = vrot.slane %v860_v2, %v981_v63  ;;  %v1074_v17 = vrot.slane %v860_v2, %v1069_v1 }
 0x193   : > { %830 = vrot.lane.b32.xlu1 %v2585_v5, %s2281_s12  ;;  %795 = vrot.lane.b32.xlu0 %v2591_v9, %s2280_s23  ;;  %v1078_v18 = vrot.slane %v861_v3, %v1069_v1  ;;  %v906_v19 = vrot.slane %v862_v6, %v2567_v39  ;;  %v2645_v20 = vrot.slane %v2632_v0, %v2558_v36 }
 0x194   : > { %1873 = vmatpush3.bf16.msra.mxu0 %v2064_v50  ;;  %1897 = vmatpush3.bf16.msra.mxu1 %v2066_v52  ;;  %v994_v21 = vrot.slane %v862_v6, %v981_v63  ;;  %v1082_v22 = vrot.slane %v862_v6, %v1069_v1  ;;  %v2649_v24 = vrot.slane %v2632_v0, %v2570_v40  ;;  %v1213_v1 = vld [vmem:[%s3057_s5] sm:$0xf] }
 0x195   : > { %1874 = vmatprep.subr.bf16.mxu0 %v2067_v53  ;;  %1898 = vmatprep.subr.bf16.mxu1 %v2069_v55  ;;  %v2652_v25 = vrot.slane %v2632_v0, %v1045_v10  ;;  %v2655_v26 = vrot.slane %v860_v2, %v2558_v36  ;;  %v2658_v27 = vrot.slane %v861_v3, %v2558_v36 }
 0x196   : > { %v2661_v28 = vrot.slane %v860_v2, %v2570_v40  ;;  %v2664_v29 = vrot.slane %v861_v3, %v2570_v40  ;;  %v2666_v30 = vrot.slane %v860_v2, %v1045_v10  ;;  %v2668_v32 = vrot.slane %v861_v3, %v1045_v10 }
 0x197   : > { %799 = vrot.lane.b32.xlu1 %v2597_v15, %s2280_s23  ;;  %828 = vrot.lane.b32.xlu0 %v2591_v9, %s2281_s12  ;;  %v2671_v34 = vmul.f32 %v894_v7, %v2583_v4  ;;  %v2674_v41 = vmul.f32 %v982_v8, %v2583_v4  ;;  %v2677_v42 = vmul.f32 %v1070_v11, %v2583_v4 }
 0x198   : > { %1875 = vmatpush3.bf16.msra.mxu0 %v2068_v54  ;;  %1899 = vmatpush3.bf16.msra.mxu1 %v2070_v56  ;;  %v2680_v43 = vmul.f32 %v902_v13, %v2585_v5  ;;  %v2683_v44 = vmul.f32 %v990_v14, %v2585_v5  ;;  %v2686_v45 = vmul.f32 %v1078_v18, %v2585_v5 }
 0x199   : > { %1876 = vmatprep.subr.bf16.mxu0 %v2071_v57  ;;  %1900 = vmatprep.subr.bf16.mxu1 %v2073_v59  ;;  %v2689_v46 = vmul.f32 %v898_v12, %v2591_v9  ;;  %v2693_v48 = vmul.f32 %v986_v16, %v2591_v9  ;;  %v2699_v49 = vrot.slane %v862_v6, %v2558_v36 }
 0x19a   : > { %v2702_v50 = vrot.slane %v862_v6, %v2570_v40  ;;  %v2704_v51 = vrot.slane %v862_v6, %v1045_v10  ;;  %v2707_v5 = vmul.f32 %v906_v19, %v2597_v15  ;;  %v2710_v52 = vmul.f32 %v994_v21, %v2597_v15 }
 0x19b   : > { %832 = vrot.lane.b32.xlu0 %v2597_v15, %s2281_s12  ;;  %803 = vrot.lane.b32.xlu1 %v2603_v23, %s2280_s23  ;;  %v2713_v35 = vmul.f32 %v1082_v22, %v2597_v15  ;;  %v2719_v53 = vrot.slane %v861_v3, %v2561_v37  ;;  %v2722_v54 = vrot.slane %v862_v6, %v2561_v37 }
 0x19c   : > { %1877 = vmatpush3.bf16.msra.mxu0 %v2072_v58  ;;  %1901 = vmatpush3.bf16.msra.mxu1 %v2074_v60  ;;  %v2724_v55 = vrot.slane %v860_v2, %v1013_v47  ;;  %v2727_v56 = vmul.f32 %v894_v7, %v2609_v31  ;;  %v2730_v57 = vmul.f32 %v898_v12, %v2603_v23 }
 0x19d   : > { %1878 = vmatprep.subr.bf16.mxu0 %v2075_v61  ;;  %v2733_v15 = vmul.f32 %v982_v8, %v2609_v31  ;;  %v2735_v60 = vrot.slane %v861_v3, %v1013_v47  ;;  %v2737_v61 = vrot.slane %v862_v6, %v1013_v47  ;;  %v2743_v63 = vmul.f32 %v1070_v11, %v2609_v31 }
 0x19e   : > { %v2750_v7 = vmul.f32 %v1074_v17, %v2603_v23  ;;  %v2753_v3 = vmul.f32 %v902_v13, %v2617_v38  ;;  %v2756_v6 = vmul.f32 %v906_v19, %v2611_v33  ;;  %v2759_v8 = vmul.f32 %v990_v14, %v2617_v38 }
 0x19f   : > { %801 = vrot.lane.b32.xlu0 %v2609_v31, %s2280_s23  ;;  %807 = vrot.lane.b32.xlu1 %v2611_v33, %s2280_s23  ;;  %v2765_v10 = vmul.f32 %v1078_v18, %v2617_v38  ;;  %v2768_v11 = vmul.f32 %v1082_v22, %v2611_v33  ;;  %v2774_v12 = vrot.slane %v1213_v1, %v2561_v37 }
 0x1a0   : > { %1879 = vmatpush3.bf16.msra.mxu0 %v2076_v62  ;;  %v2740_v62 = vmul.f32 %v986_v16, %v2603_v23  ;;  %v2778_v13 = vrot.slane %v2632_v0, %v2561_v37  ;;  %v2781_v14 = vrot.slane %v2632_v0, %v1013_v47  ;;  %v2795_v0 = vrot.slane %v1213_v1, %v2558_v36 }
 0x1a1   : > { %3098 = vst [vmem:[#allocation17_spill] sm:$0xff] %v2768_v11  ;;  %3099 = vst [vmem:[#allocation18_spill] sm:$0xff] %v2774_v12  ;;  %v2824_v11 = vld [vmem:[#allocation7 + $0x28] ss:$0 sm:$0xff] }
 0x1a2   : > { %3100 = vst [vmem:[#allocation19_spill] sm:$0xff] %v2778_v13  ;;  %3101 = vst [vmem:[#allocation20_spill] sm:$0xff] %v2781_v14 }
 0x1a3   : > { %805 = vrot.lane.b32.xlu0 %v2617_v38, %s2280_s23  ;;  %836 = vrot.lane.b32.xlu1 %v2603_v23, %s2281_s12  ;;  %v1243_v23 = vld [vmem:[%s3058_s6] sm:$0xf]  ;;  %3104 = vst [vmem:[#allocation23_spill] sm:$0xff] %v2795_v0  ;;  %s1669_s23 = sshll.u32 %s421_s1, 4  ;;  %s3008_s23 = int_to_ptr.vmem [resolvable:$true] %s1669_s23 }
 0x1a4   : > { %v2798_v47 = vrot.slane %v1243_v23, %v2567_v39  ;;  %v2804_v13 = vrot.slane %v1243_v23, %v2570_v40  ;;  %s2193_s29 = scalar_lea.vmem %s3008_s23, 256  ;;  %p2200_p12 = scmp.lt.s32.totalorder %s3008_s23, %s2198_s25 }
 0x1a5   : > { %p2194_p10 = scmp.ne.s32.totalorder %s3008_s23, %s2193_s29  ;;  %p2201_p2 = scmp.lt.s32.totalorder %s2199_s22, %s2193_s29 }
 0x1a6   : > { %3105 = vst [vmem:[#allocation24_spill] sm:$0xff] %v2798_v47  ;;  %3106 = vst [vmem:[#allocation25_spill] sm:$0xff] %v2804_v13 }
 0x1a7   : > { %838 = vrot.lane.b32.xlu0 %v2617_v38, %s2281_s12  ;;  %840 = vrot.lane.b32.xlu1 %v2611_v33, %s2281_s12  ;;  %v2784_v38 = vrot.slane %v1213_v1, %v2567_v39  ;;  %p2195_p3 = pnand %p2194_p10, %p2485_p5  ;;  %p2202_p1 = por %p2201_p2, %p2200_p12 }
 0x1a9   : > { %3102 = vst [vmem:[#allocation21_spill] sm:$0xff] %v2784_v38  ;;  %p2196_p7 = pneg %p2195_p3 }
 0x1ab   : > { %826 = vrot.lane.b32.xlu0 %v2583_v4, %s2281_s12  ;;  %834 = vrot.lane.b32.xlu1 %v2609_v31, %s2281_s12  ;;  %v2696_v4 = vmul.f32 %v1074_v17, %v2591_v9  ;;  %v2716_v9 = vrot.slane %v860_v2, %v2561_v37  ;;  %v2762_v31 = vmul.f32 %v994_v21, %v2611_v33  ;;  %p2203_p4 = pnand %p2202_p1, %p2196_p7 }
 0x1ac   : > { %v2790_v21 = vrot.slane %v1213_v1, %v2570_v40  ;;  %v2812_v1 = vrot.slane %v1243_v23, %v2558_v36 }
 0x1ae   : > { %3103 = vst [vmem:[#allocation22_spill] sm:$0xff] %v2790_v21  ;;  %v2809_v21 = vrot.slane %v1243_v23, %v2561_v37  ;;  %3108 = vst [vmem:[#allocation27_spill] sm:$0xff] %v2812_v1 }
 0x1b0   : > { %3107 = vst [vmem:[#allocation26_spill] sm:$0xff] %v2809_v21 }
 0x201   : > { %v798_v58 = vpop.permute.xlu1 %797  ;;  %v794_v59 = vpop.permute.xlu0 %793 }
 0x202   : > { %v824_v2 = vsel %vm809_vm0, 0.0, %v794_v59 }
 0x203   : > { %v883_v33 = vmul.f32 %v2645_v20, %v824_v2  ;;  %v971_v16 = vmul.f32 %v2649_v24, %v824_v2  ;;  %v1059_v17 = vmul.f32 %v2652_v25, %v824_v2 }
 0x205   : > { %v831_v18 = vpop.permute.xlu1 %830  ;;  %v796_v19 = vpop.permute.xlu0 %795  ;;  %v2815_v39 = vadd.f32 %v2671_v34, %v883_v33  ;;  %v2818_v0 = vadd.f32 %v2674_v41, %v971_v16  ;;  %v2821_v47 = vadd.f32 %v2677_v42, %v1059_v17 }
 0x206   : > { %v810_v22 = vsel %vm809_vm0, %v794_v59, %v796_v19  ;;  %v811_v12 = vsel %vm809_vm0, %v796_v19, %v798_v58 }
 0x207   : > { %v884_v38 = vmul.f32 %v2655_v26, %v810_v22  ;;  %v885_v2 = vmul.f32 %v2658_v27, %v811_v12  ;;  %v972_v14 = vmul.f32 %v2661_v28, %v810_v22  ;;  %v973_v59 = vmul.f32 %v2664_v29, %v811_v12  ;;  %3109 = vst [vmem:[#allocation28_spill] sm:$0xff] %v2818_v0 }
 0x208   : > { %v1060_v19 = vmul.f32 %v2666_v30, %v810_v22  ;;  %3110 = vst [vmem:[#allocation29_spill] sm:$0xff] %v2821_v47  ;;  %v1061_v40 = vmul.f32 %v2668_v32, %v811_v12 }
 0x209   : > { %v800_v13 = vpop.permute.xlu1 %799  ;;  %v2826_v22 = vpop.permute.xlu0 %828  ;;  %v916_v37 = vadd.f32 %v2689_v46, %v884_v38  ;;  %v917_v36 = vadd.f32 %v2680_v43, %v885_v2  ;;  %v1004_v23 = vadd.f32 %v2693_v48, %v972_v14  ;;  %v1005_v16 = vadd.f32 %v2683_v44, %v973_v59  ;;  %v2846_v14 = vld [vmem:[#allocation7 + $0x30] ss:$0 sm:$0xff]  ;;  %v2848_v2 = vld [vmem:[#allocation7 + $0x38] ss:$0 sm:$0xff] }
 0x20a   : > { %v812_v34 = vsel %vm809_vm0, %v798_v58, %v800_v13  ;;  %v844_v41 = vsel %vm842_vm1, %v2826_v22, %v831_v18  ;;  %v1092_v17 = vadd.f32 %v2696_v4, %v1060_v19  ;;  %v1093_v58 = vadd.f32 %v2686_v45, %v1061_v40 }
 0x20b   : > { %v886_v42 = vmul.f32 %v2699_v49, %v812_v34  ;;  %v974_v12 = vmul.f32 %v2702_v50, %v812_v34  ;;  %v940_v33 = vmul.f32 %v2716_v9, %v844_v41  ;;  %v1062_v46 = vmul.f32 %v2704_v51, %v812_v34 }
 0x20c   : > { %v1116_v43 = vmul.f32 %v2824_v11, %v844_v41  ;;  %v1028_v48 = vmul.f32 %v2724_v55, %v844_v41 }
 0x20d   : > { %v918_v13 = vadd.f32 %v2707_v5, %v886_v42  ;;  %v2843_v38 = vadd.f32 %v940_v33, %v916_v37  ;;  %v833_v1 = vpop.permute.xlu0 %832  ;;  %v804_v44 = vpop.permute.xlu1 %803  ;;  %v1006_v4 = vadd.f32 %v2710_v52, %v974_v12  ;;  %v1094_v41 = vadd.f32 %v2713_v35, %v1062_v46 }
 0x20e   : > { %v2851_v59 = vadd.f32 %v1116_v43, %v1092_v17  ;;  %v845_v19 = vsel %vm842_vm1, %v831_v18, %v833_v1  ;;  %v857_v45 = vsel %vm842_vm1, %v833_v1, 0.0  ;;  %v1036_v33 = vadd.f32 %v1028_v48, %v1004_v23 }
 0x20f   : > { %v1141_v5 = vrot.slane %v2843_v38, 7  ;;  %v941_v40 = vmul.f32 %v2719_v53, %v845_v19  ;;  %v942_v37 = vmul.f32 %v2722_v54, %v857_v45  ;;  %v1029_v34 = vmul.f32 %v2735_v60, %v845_v19 }
 0x210   : > { %v1030_v42 = vmul.f32 %v2737_v61, %v857_v45  ;;  %v1117_v52 = vmul.f32 %v2846_v14, %v845_v19  ;;  %v1118_v12 = vmul.f32 %v2848_v2, %v857_v45  ;;  %v1184_v47 = vrot.slane %v2851_v59, 1  ;;  %v3112_v59 = vld [vmem:[#allocation19_spill] sm:$0xff] }
 0x211   : > { %v1161_v18 = vsel %vm1139_vm2, 0.0, %v1141_v5  ;;  %v2866_v1 = vadd.f32 %v941_v40, %v917_v36  ;;  %v2868_v17 = vadd.f32 %v942_v37, %v918_v13  ;;  %v802_v43 = vpop.permute.xlu0 %801  ;;  %v808_v21 = vpop.permute.xlu1 %807  ;;  %v1037_v35 = vadd.f32 %v1029_v34, %v1005_v16 }
 0x212   : > { %v2871_v46 = vadd.f32 %v1117_v52, %v1093_v58  ;;  %v2873_v0 = vadd.f32 %v1118_v12, %v1094_v41  ;;  %v813_v48 = vsel %vm809_vm0, %v802_v43, %v804_v44  ;;  %v825_v36 = vsel %vm809_vm0, 0.0, %v802_v43 }
 0x213   : > { %v1142_v19 = vrot.slane %v2866_v1, 7  ;;  %v1143_v23 = vrot.slane %v2868_v17, 7  ;;  %v2879_v45 = vadd.f32 %v1161_v18, %v1036_v33  ;;  %v1038_v13 = vadd.f32 %v1030_v42, %v1006_v4 }
 0x214   : > { %v887_v40 = vmul.f32 %v2645_v20, %v825_v36  ;;  %v888_v37 = vmul.f32 %v2655_v26, %v813_v48  ;;  %v975_v34 = vmul.f32 %v2649_v24, %v825_v36  ;;  %v976_v41 = vmul.f32 %v2661_v28, %v813_v48 }
 0x215   : > { %v1162_v16 = vsel %vm1139_vm2, 0.0, %v1142_v19  ;;  %v1163_v58 = vsel %vm1139_vm2, 0.0, %v1143_v23  ;;  %v806_v52 = vpop.permute.xlu0 %805  ;;  %v837_v12 = vpop.permute.xlu1 %836  ;;  %v1187_v20 = vrot.slane %v2871_v46, 1  ;;  %v1190_v26 = vrot.slane %v2873_v0, 1 }
 0x216   : > { %v2891_v33 = vadd.f32 %v1162_v16, %v1037_v35  ;;  %v2893_v4 = vadd.f32 %v1163_v58, %v1038_v13  ;;  %v2898_v42 = vadd.f32 %v2727_v56, %v887_v40  ;;  %v920_v18 = vadd.f32 %v2730_v57, %v888_v37  ;;  %v3111_v37 = vld [vmem:[#allocation17_spill] sm:$0xff] }
 0x217   : > { %v1063_v43 = vmul.f32 %v2652_v25, %v825_v36  ;;  %v1064_v24 = vmul.f32 %v2666_v30, %v813_v48  ;;  %v2904_v28 = vadd.f32 %v2733_v15, %v975_v34  ;;  %v1008_v35 = vadd.f32 %v2740_v62, %v976_v41 }
 0x218   : > { %v814_v13 = vsel %vm809_vm0, %v804_v44, %v806_v52  ;;  %v815_v16 = vsel %vm809_vm0, %v806_v52, %v808_v21 }
 0x219   : > { %v2910_v58 = vadd.f32 %v2743_v63, %v1063_v43  ;;  %v1096_v56 = vadd.f32 %v2750_v7, %v1064_v24  ;;  %v889_v57 = vmul.f32 %v2658_v27, %v814_v13  ;;  %v890_v25 = vmul.f32 %v2699_v49, %v815_v16  ;;  %v839_v30 = vpop.permute.xlu0 %838  ;;  %v841_v48 = vpop.permute.xlu1 %840 }
 0x21a   : > { %v977_v15 = vmul.f32 %v2664_v29, %v814_v13  ;;  %v978_v62 = vmul.f32 %v2702_v50, %v815_v16  ;;  %v1065_v44 = vmul.f32 %v2668_v32, %v814_v13  ;;  %v1066_v21 = vmul.f32 %v2704_v51, %v815_v16 }
 0x21b   : > { %v921_v36 = vadd.f32 %v2753_v3, %v889_v57  ;;  %v922_v63 = vadd.f32 %v2756_v6, %v890_v25  ;;  %v847_v7 = vsel %vm842_vm1, %v837_v12, %v839_v30  ;;  %v848_v27 = vsel %vm842_vm1, %v839_v30, %v841_v48 }
 0x21c   : > { %v1009_v49 = vadd.f32 %v2759_v8, %v977_v15  ;;  %v1010_v40 = vadd.f32 %v2762_v31, %v978_v62  ;;  %v1097_v29 = vadd.f32 %v2765_v10, %v1065_v44  ;;  %v1098_v50 = vadd.f32 %v3111_v37, %v1066_v21  ;;  %v1819_v21 = vld [vmem:[#allocation7 + $0x20] ss:$0 sm:$0xff]  ;;  %v3114_v37 = vld [vmem:[#allocation28_spill] sm:$0xff] }
 0x21d   : > { %v944_v32 = vmul.f32 %v2716_v9, %v847_v7  ;;  %v1032_v51 = vmul.f32 %v2724_v55, %v847_v7  ;;  %v1120_v3 = vmul.f32 %v2824_v11, %v847_v7  ;;  %v858_v6 = vsel %vm842_vm1, %v841_v48, 0.0  ;;  %v827_v9 = vpop.permute.xlu0 %826  ;;  %v835_v13 = vpop.permute.xlu1 %834  ;;  %v3113_v7 = vld [vmem:[#allocation20_spill] sm:$0xff] }
 0x21e   : > { %v945_v34 = vmul.f32 %v2719_v53, %v848_v27  ;;  %v946_v41 = vmul.f32 %v2722_v54, %v858_v6  ;;  %v1033_v8 = vmul.f32 %v2735_v60, %v848_v27  ;;  %v1034_v31 = vmul.f32 %v2737_v61, %v858_v6 }
 0x21f   : > { %v952_v52 = vadd.f32 %v944_v32, %v920_v18  ;;  %v1040_v10 = vadd.f32 %v1032_v51, %v1008_v35  ;;  %v1128_v43 = vadd.f32 %v1120_v3, %v1096_v56  ;;  %v1121_v24 = vmul.f32 %v2846_v14, %v848_v27 }
 0x220   : > { %v953_v55 = vadd.f32 %v945_v34, %v921_v36  ;;  %v954_v16 = vadd.f32 %v946_v41, %v922_v63  ;;  %v1041_v11 = vadd.f32 %v1033_v8, %v1009_v49  ;;  %v1042_v57 = vadd.f32 %v1034_v31, %v1010_v40 }
 0x221   : > { %v1146_v25 = vrot.slane %v952_v52, 7  ;;  %v1185_v30 = vrot.slane %v1128_v43, 1  ;;  %v1122_v53 = vmul.f32 %v2848_v2, %v858_v6  ;;  %v1129_v54 = vadd.f32 %v1121_v24, %v1097_v29  ;;  %v3116_v6 = vld [vmem:[#allocation29_spill] sm:$0xff] }
 0x222   : > { %v1148_v48 = vrot.slane %v953_v55, 7  ;;  %v1150_v60 = vrot.slane %v954_v16, 7  ;;  %v843_v61 = vsel %vm842_vm1, %v827_v9, %v2826_v22  ;;  %v846_v18 = vsel %vm842_vm1, %v835_v13, %v837_v12  ;;  %v3118_v13 = vld [vmem:[#allocation24_spill] sm:$0xff] }
 0x223   : > { %v1147_v14 = vsel %vm1139_vm2, %v1141_v5, %v1146_v25  ;;  %v1186_v35 = vsel %vm1180_vm3, %v1184_v47, %v1185_v30  ;;  %v1202_v56 = vsel %vm1180_vm3, %v1185_v30, 0.0  ;;  %v1130_v15 = vadd.f32 %v1122_v53, %v1098_v50 }
 0x224   : > { %v1169_v2 = vadd.f32 %v1147_v14, %v1040_v10  ;;  %v1149_v62 = vsel %vm1139_vm2, %v1142_v19, %v1148_v48  ;;  %v1151_v22 = vsel %vm1139_vm2, %v1143_v23, %v1150_v60  ;;  %v1188_v12 = vrot.slane %v1129_v54, 1  ;;  %v3120_v48 = vld [vmem:[#allocation25_spill] sm:$0xff] }
 0x225   : > { %v1170_v38 = vadd.f32 %v1149_v62, %v1041_v11  ;;  %v1171_v44 = vadd.f32 %v1151_v22, %v1042_v57  ;;  %v1191_v5 = vrot.slane %v1130_v15, 1  ;;  %v939_v36 = vmul.f32 %v3112_v59, %v843_v61  ;;  %v3119_v57 = vld [vmem:[#allocation22_spill] sm:$0xff] }
 0x226   : > { %v1210_v47 = vadd.f32 %v1202_v56, %v1169_v2  ;;  %v1189_v63 = vsel %vm1180_vm3, %v1187_v20, %v1188_v12  ;;  %v1203_v1 = vsel %vm1180_vm3, %v1188_v12, 0.0  ;;  %v1027_v19 = vmul.f32 %v3113_v7, %v843_v61  ;;  %v3115_v20 = vld [vmem:[#allocation18_spill] sm:$0xff] }
 0x227   : > { %v1192_v17 = vsel %vm1180_vm3, %v1190_v26, %v1191_v5  ;;  %v1204_v23 = vsel %vm1180_vm3, %v1191_v5, 0.0  ;;  %v1207_v27 = vadd.f32 %v1189_v63, %v2891_v33  ;;  %v1211_v49 = vadd.f32 %v1203_v1, %v1170_v38  ;;  %v3117_v33 = vld [vmem:[#allocation21_spill] sm:$0xff]  ;;  %v3121_v2 = vld [vmem:[#allocation26_spill] sm:$0xff]  ;;  %v3123_v1 = vld [vmem:[#allocation27_spill] sm:$0xff] }
 0x228   : > { %v1212_v40 = vadd.f32 %v1204_v23, %v1171_v44  ;;  %v947_v29 = vadd.f32 %v939_v36, %v2815_v39  ;;  %v1035_v46 = vadd.f32 %v1027_v19, %v3114_v37  ;;  %v1115_v50 = vmul.f32 %v1819_v21, %v843_v61  ;;  %v3122_v44 = vld [vmem:[#allocation23_spill] sm:$0xff] }
 0x229   : > { %v1241_v32 = vmul.f32 %v3115_v20, %v1211_v49  ;;  %v943_v51 = vmul.f32 %v3112_v59, %v846_v18  ;;  %v1031_v3 = vmul.f32 %v3113_v7, %v846_v18  ;;  %v1119_v0 = vmul.f32 %v1819_v21, %v846_v18 }
 0x22a   : > { %v1123_v26 = vadd.f32 %v1115_v50, %v3116_v6  ;;  %v1140_v34 = vrot.slane %v947_v29, 7  ;;  %v1206_v41 = vadd.f32 %v1186_v35, %v2879_v45  ;;  %v1240_v8 = vmul.f32 %v3117_v33, %v1210_v47 }
 0x22b   : > { %v951_v31 = vadd.f32 %v943_v51, %v2898_v42  ;;  %v1039_v39 = vadd.f32 %v1031_v3, %v2904_v28  ;;  %v1127_v52 = vadd.f32 %v1119_v0, %v2910_v58  ;;  %v1208_v10 = vadd.f32 %v1192_v17, %v2893_v4 }
 0x22c   : > { %v1160_v43 = vsel %vm1139_vm2, 0.0, %v1140_v34  ;;  %v1181_v24 = vrot.slane %v1123_v26, 1  ;;  %v1236_v9 = vmul.f32 %v3117_v33, %v1206_v41  ;;  %v1270_v55 = vadd.f32 %v3118_v13, %v1240_v8 }
 0x22d   : > { %v1164_v16 = vadd.f32 %v1160_v43, %v1035_v46  ;;  %v1144_v11 = vrot.slane %v951_v31, 7  ;;  %v1182_v45 = vrot.slane %v1127_v52, 1  ;;  %v1238_v25 = vmul.f32 %v3119_v57, %v1208_v10 }
 0x22e   : > { %v1266_v42 = vadd.f32 %v3118_v13, %v1236_v9  ;;  %v1278_v30 = vmax.f32 %v1270_v55, 0.0  ;;  %v1242_v28 = vmul.f32 %v3119_v57, %v1212_v40  ;;  %v1237_v58 = vmul.f32 %v3115_v20, %v1207_v27  ;;  %v2078_v9 = vld [vmem:[%s2540_s11] sm:$0xff]   ;;  %s1656_s11 = scalar_lea.sflag [#allocation4], %s2536_s28 }
 0x22f   : > { %v1145_v4 = vsel %vm1139_vm2, %v1140_v34, %v1144_v11  ;;  %v1183_v53 = vsel %vm1180_vm3, %v1181_v24, %v1182_v45  ;;  %v1201_v54 = vsel %vm1180_vm3, %v1182_v45, 0.0  ;;  %v1268_v60 = vadd.f32 %v3120_v48, %v1238_v25  ;;  %v1856_v24 = vld [vmem:[%s3061_s9] ss:$0 sm:$0xff] }
 0x230   : > { %v1168_v61 = vadd.f32 %v1145_v4, %v1039_v39  ;;  %v1205_v18 = vadd.f32 %v1183_v53, %v1164_v16  ;;  %v1274_v14 = vmax.f32 %v1266_v42, 0.0  ;;  %v1286_v35 = vmin.f32 %v1278_v30, 6.0  ;;  %v1855_v39 = vld [vmem:[%s3060_s8] ss:$0 sm:$0xff] }
 0x231   : > { %v1272_v56 = vadd.f32 %v3120_v48, %v1242_v28  ;;  %v1276_v15 = vmax.f32 %v1268_v60, 0.0  ;;  %v1267_v62 = vadd.f32 %v3121_v2, %v1237_v58  ;;  %v1271_v22 = vadd.f32 %v3121_v2, %v1241_v32 }
 0x232   : > { %v1209_v12 = vadd.f32 %v1201_v54, %v1168_v61  ;;  %v1282_v38 = vmin.f32 %v1274_v14, 6.0  ;;  %v1235_v5 = vmul.f32 %v3122_v44, %v1205_v18  ;;  %v1649_v13 = vunpack.c.l.bf16 %v2078_v9 }
 0x233   : > { %v1280_v21 = vmax.f32 %v1272_v56, 0.0  ;;  %v1275_v59 = vmax.f32 %v1267_v62, 0.0  ;;  %v1279_v36 = vmax.f32 %v1271_v22, 0.0  ;;  %v1284_v19 = vmin.f32 %v1276_v15, 6.0 }
 0x234   : > { %v1239_v47 = vmul.f32 %v3122_v44, %v1209_v12  ;;  %v1290_v63 = vpack.c.bf16 %v1286_v35, %v1282_v38  ;;  %v1265_v7 = vadd.f32 %v3123_v1, %v1235_v5  ;;  %v1650_v11 = vunpack.c.h.bf16 %v2078_v9 }
 0x235   : > { %v1288_v17 = vmin.f32 %v1280_v21, 6.0  ;;  %v1283_v23 = vmin.f32 %v1275_v59, 6.0  ;;  %v1287_v27 = vmin.f32 %v1279_v36, 6.0 }
 0x236   : > { %1581 = vmatprep.mubr.bf16.mxu0 %v1290_v63  ;;  %v1269_v49 = vadd.f32 %v3123_v1, %v1239_v47  ;;  %v1273_v40 = vmax.f32 %v1265_v7, 0.0 }
 0x237   : > { %v1292_v29 = vpack.c.bf16 %v1288_v17, %v1284_v19  ;;  %v1291_v37 = vpack.c.bf16 %v1287_v27, %v1283_v23 }
 0x238   : > { %v1277_v46 = vmax.f32 %v1269_v49, 0.0  ;;  %v1281_v50 = vmin.f32 %v1273_v40, 6.0 }
 0x239   : > { %1622 = vmatprep.mubr.bf16.mxu1 %v1292_v29 }
 0x23a   : > { %1623 = vmatmul.mubr.bf16.vlgmr.msra.gmra.mrb[4].mxu1 %v1291_v37  ;;  %v1285_v20 = vmin.f32 %v1277_v46, 6.0 }
 0x23c   : > { %v1289_v32 = vpack.c.bf16 %v1285_v20, %v1281_v50 }
 0x23e   : > { %1582 = vmatmul.mubr.bf16.vlgmr.msra.gmra.mrb[4].mxu0 %v1289_v32 }
 0x30d   : > { %v1902_v51 = vpop.f32.mrb[4].mxu1 }
 0x30e   : > { %v1903_v3 = vpop.f32.mrb[5].mxu1 }
 0x30f   : > { %v1904_v0 = vadd.f32 %v1903_v3, %v1902_v51  ;;  %v1905_v6 = vpop.f32.mrb[6].mxu1 }
 0x310   : > { %v1906_v26 = vpop.f32.mrb[7].mxu1 }
 0x311   : > { %v1880_v34 = vpop.f32.mrb[4].mxu0  ;;  %v1907_v41 = vadd.f32 %v1906_v26, %v1905_v6 }
 0x312   : > { %v1881_v33 = vpop.f32.mrb[5].mxu0 }
 0x313   : > { %v1882_v8 = vadd.f32 %v1881_v33, %v1880_v34  ;;  %v1883_v31 = vpop.f32.mrb[6].mxu0 }
 0x314   : > { %v1884_v52 = vpop.f32.mrb[7].mxu0 }
 0x315   : > { %v1625_v10 = vadd.f32 %v1904_v0, %v1882_v8  ;;  %v1885_v43 = vadd.f32 %v1884_v52, %v1883_v31 }
 0x317   : > { %v1638_v55 = vmul.f32 %v1855_v39, %v1625_v10  ;;  %v1628_v16 = vadd.f32 %v1907_v41, %v1885_v43 }
 0x319   : > { %v1647_v45 = vadd.f32 %v1856_v24, %v1638_v55  ;;  %v1639_v57 = vmul.f32 %v1855_v39, %v1628_v16 }
 0x31b   : > { %v1651_v25 = vadd.f32 %v1649_v13, %v1647_v45  ;;  %v1648_v42 = vadd.f32 %v1856_v24, %v1639_v57 }
 0x31d   : > { %1653 = vst [vmem:[%s421_s1] sm:$0xff] %v1651_v25  ;;  %v1652_v30 = vadd.f32 %v1650_v11, %v1648_v42 }
 0x31f   : > { %1654 = vst [vmem:[%s421_s1 + $0x8] sm:$0xff] %v1652_v30 }
 0x320   : > { %2206 = shalt.err (!%p2203_p4)
}
 0x321   : > { %s2207_s26 = scalar_lea.hbm %s3006_s18, 256  ;;  %s2211_s13 = scalar_lea.hbm %s3124_s27, 512 }
 0x322   : > { %p2208_p9 = scmp.ne.s32.totalorder %s3006_s18, %s2207_s26  ;;  %p2212_p8 = scmp.lt.u32.totalorder %s3006_s18, %s3124_s27 }
 0x323   : > { %p2213_p13 = scmp.lt.u32.totalorder %s2211_s13, %s2207_s26  ;;  %p2215_p10 = scmp.lt.u32.totalorder %s2207_s26, %s3006_s18 }
 0x324   : > { %p2209_p0 = pnand %p2208_p9, %p2485_p5 }
 0x325   : > { %p2214_p6 = por %p2213_p13, %p2212_p8 }
 0x326   : > { %p2210_p11 = pneg %p2209_p0 }
 0x327   : > { %p2216_p3 = por %p2215_p10, %p2214_p6 }
 0x329   : > { %p2217_p7 = pnand %p2216_p3, %p2210_p11 }
 0x32b   : > { %2220 = shalt.err (!%p2217_p7)
}
 0x32c   : > { %s2283_s10 = smov 128   ;;  %s2284_s29 = smov 8  }
 0x32d   : > { %1922 = dma.vmem_to_hbm [thread:$0]  (%p2485_p5), %s3008_s23, 256, %s3006_s18, %s1656_s11, %s2283_s10, %s2283_s10, %s2284_s29  }
 0x32e PF: > { %s3125_s17 = sld [smem:[#allocation15_spill]]  ;;  %s3126_s25 = sld [smem:[#allocation16_spill]] }
 0x32f   : > { %p3128_p2 = scmp.ge.s32.totalorder %s2267_s16, 2 }
 0x334   : > { %s1684_s22 = sand.u32 1, %s3125_s17   ;;  %p3127_p12 = scmp.ne.s32.totalorder %s3126_s25, 0 }
 0x335   : > { %s1685_s26 = scalar_lea.sflag [#allocation4], %s1684_s22 }
 0x336   : > { %p1939_p1 = pnand %p3128_p2, %p3127_p12 }
 0x338   : > { %2250 = dma.done.wait (!%p1939_p1), %s1685_s26, 256  }
 0x339   : > { %2252 = vsyncadd (!%p1939_p1), %s1685_s26, 4294967040  ;;  %p25_p4 = scmp.ge.s32.totalorder %s2471_s20, 4   ;;  %s3129_s13 = smov %s2259_s14 }
 0x33a   : > { %s3130_s14 = smov %s2263_s15  ;;  %s3131_s15 = smov %s2481_s30 }
 0x33b   : > { %s3132_s16 = smov %s2471_s20  ;;  %27 = sbr.rel (!%p25_p4) target bundleno = 10 (0xa), region = 117 }
 0x342   :  { %1690 = vsyncpa [#allocation3], 1 }
 0x343   :  { %1692 = vsyncpa [#allocation3 + $0x1], 1 }
 0x344   :  { %1693 = vsyncpa [#allocation6], 1 }
 0x345   :  { %1694 = vsyncpa [#allocation9], 1 }
 0x346   :  { %1695 = vsyncpa [#allocation4], 1 }
 0x347   :  { %1697 = vsyncpa [#allocation4 + $0x1], 1 }

</bundles_post_ra>
